<compile_context>
chip_gen: v7x
topology: tpu7x:2x2x1
jax: 0.10.0
libtpu: 0.0.40
codegen_flags: <defaults>
</compile_context>

<pallas_src>
from functools import partial

import numpy as np
import jax
import jax.numpy as jnp
from jax.experimental import pallas as pl
from jax.experimental.pallas import tpu as pltpu


def _encoder_kernel(*refs, K, P, H, W, HW, Nb, pad0, apply_pool, post_lane_dense):
    """One grid step = Nb batch elements, NCHW with spatial flattened onto lanes.

    refs (apply_pool=True):
      x_ref    : (Nb, Cin, H*W)         input, flat spatial on lanes
      mask_ref : (K*K, 1, Nb*H*W)       per-tap border-validity masks (0/1)
      w_ref    : (Cout, K*K*Cin)        conv weights (BN scale folded), cols = (kh,kw,cin)
      bias_ref : (Cout, 1)              conv bias + BN shift (folded), f32
      film_ref : (Nb, 2*Cout, 1)        FiLM gamma (rows :Cout) and beta (rows Cout:)
      sel_ref  : (W, 2*Wo)              0/1 even/odd column picker for the 2x2 max
      pre_ref  : (Nb, Cout, H*W)        pre-pool output
      post_ref : (Cout, Nb*Ho*Wo)       post-pool output (lane-dense)  [or (Nb,Cout,Ho*Wo)]
      xpad_ref : (Cin, 2*pad0 + Nb*H*W) zero-padded staging scratch (VMEM)
    """
    if apply_pool:
        (x_ref, mask_ref, w_ref, bias_ref, film_ref, sel_ref,
         pre_ref, post_ref, xpad_ref) = refs
    else:
        (x_ref, mask_ref, w_ref, bias_ref, film_ref, pre_ref, xpad_ref) = refs
        sel_ref = post_ref = None

    Cin = x_ref.shape[1]
    Cout = bias_ref.shape[0]
    L = Nb * HW
    Ho, Wo = H // 2, W // 2
    pad_total = xpad_ref.shape[-1]

    # ---- Stage the whole batch block contiguously on the lane axis of a zero-padded
    #      VMEM scratch; the pad strips keep every tap-offset window read in bounds.
    xpad_ref[:, 0:pad0] = jnp.zeros((Cin, pad0), xpad_ref.dtype)
    xpad_ref[:, pad0 + L:pad_total] = jnp.zeros((Cin, pad_total - pad0 - L), xpad_ref.dtype)
    for b in range(Nb):
        xpad_ref[:, pad0 + b * HW: pad0 + (b + 1) * HW] = x_ref[b]

    # ---- im2col on lanes: K*K shifted + masked copies of the (Cin, L) input.
    #      Shifts are static-offset window reads; masks implement the zero padding
    #      and isolate neighboring images after the batch fold.
    taps = []
    for kh in range(K):
        for kw in range(K):
            d = (kh - P) * W + (kw - P)
            t = xpad_ref[:, pad0 + d: pad0 + d + L]            # (Cin, L)
            taps.append(t * mask_ref[kh * K + kw])             # (Cin, L) * (1, L)
    xcol = jnp.concatenate(taps, axis=0)                       # (K*K*Cin, L)

    # ---- Single MXU push for the whole batch block (36-deep contraction).
    y = jnp.dot(w_ref[...], xcol, preferred_element_type=jnp.float32)   # (Cout, L)
    y = jnp.maximum(y + bias_ref[...], 0.0)                    # conv bias + BN folded, ReLU

    pooled_blocks = []
    for b in range(Nb):                                        # cheap elementwise / store plumbing
        fb = film_ref[b]                                       # (2*Cout, 1)
        gamma, beta = fb[:Cout], fb[Cout:]
        yb = y[:, b * HW:(b + 1) * HW] * gamma + beta          # FiLM, (Cout, HW)
        pre_ref[b] = yb.astype(pre_ref.dtype)                  # lane-dense store (HW lanes)

        if apply_pool:
            # MaxPool2d(2,2): per output row, vertical max of two adjacent rows
            # (static lane windows), then a small (W, 2*Wo) 0/1 selection matmul
            # separates even/odd columns so the horizontal max is one jnp.maximum.
            sel = sel_ref[...]                                 # (W, 2*Wo)
            rows = []
            for io in range(Ho):
                s0 = 2 * io * W
                top = yb[:, s0:s0 + W]
                bot = yb[:, s0 + W:s0 + 2 * W]
                rm = jnp.maximum(top, bot)                     # (Cout, W)
                prod = jnp.dot(rm, sel, preferred_element_type=jnp.float32)  # (Cout, 2*Wo)
                rows.append(jnp.maximum(prod[:, :Wo], prod[:, Wo:]))         # (Cout, Wo)
            pooled_b = jnp.concatenate(rows, axis=1)           # (Cout, Ho*Wo)
            if post_lane_dense:
                pooled_blocks.append(pooled_b)
            else:
                post_ref[b] = pooled_b.astype(post_ref.dtype)

    if apply_pool and post_lane_dense:
        # One dense store of the whole grid step: (Cout, Nb*Ho*Wo) >= 128 lanes.
        post_ref[...] = jnp.concatenate(pooled_blocks, axis=1).astype(post_ref.dtype)


def encoder_forward(x_nchw, emb, params, *, kernel_size, padding, apply_pool,
                    out_dtype=jnp.float32, mxu_dtype=jnp.float32, batch_block=None):
    N, Cin, H, W = x_nchw.shape
    Cout = params["conv_w"].shape[0]
    K, P = kernel_size, padding
    if 2 * P != K - 1:
        raise ValueError("kernel assumes a 'same' convolution: 2*padding == kernel_size - 1")
    if apply_pool and (H % 2 or W % 2):
        raise ValueError("MaxPool2d(2,2) path assumes even H and W")
    HW = H * W
    Ho, Wo = H // 2, W // 2
    eps = 1e-5

    # ---- batch block: prefer >=2 grid steps (both v7x TensorCores busy) while folding
    #      as many images as possible onto the lane axis; cap the folded lane extent.
    if batch_block is None:
        divisors = [d for d in range(1, N + 1) if N % d == 0]
        cands = [d for d in divisors if N // d >= 2] or [N]
        cands = [d for d in cands if d * HW <= (1 << 15)] or [min(cands)]
        batch_block = max(cands)
    if N % batch_block:
        raise ValueError("batch_block must divide the batch size")
    Nb = batch_block
    L = Nb * HW
    pad0 = max(128, ((P * (W + 1) + 127) // 128) * 128)        # 128-aligned pad strips
    padL = 2 * pad0 + L

    # ---- Conv weights with the BatchNorm scale folded in; columns ordered (kh,kw,cin).
    bns = params["bn_gamma"] / jnp.sqrt(params["bn_var"] + eps)             # (Cout,)
    w2 = jnp.transpose(params["conv_w"] * bns[:, None, None, None], (0, 2, 3, 1))
    w2 = w2.reshape(Cout, K * K * Cin).astype(mxu_dtype)
    bias = (params["conv_b"] * bns + params["bn_beta"] - params["bn_mean"] * bns)
    bias = bias.reshape(Cout, 1).astype(jnp.float32)

    # ---- FiLM linear hoisted out of the kernel; gamma/beta as one (N, 2*Cout, 1) tensor.
    film = (emb.astype(jnp.float32) @ params["film_w"].T.astype(jnp.float32)
            + params["film_b"].astype(jnp.float32)).reshape(N, 2 * Cout, 1)

    # ---- Per-tap border-validity masks (conv zero padding + batch-fold isolation).
    ii, jj = np.meshgrid(np.arange(H), np.arange(W), indexing="ij")
    masks = np.zeros((K * K, 1, HW), np.float32)
    for kh in range(K):
        for kw in range(K):
            dh, dw = kh - P, kw - P
            valid = ((ii + dh >= 0) & (ii + dh < H) & (jj + dw >= 0) & (jj + dw < W))
            masks[kh * K + kw, 0] = valid.reshape(HW)
    masks = jnp.asarray(np.tile(masks, (1, 1, Nb)), dtype=mxu_dtype)        # (K*K, 1, L)

    x_flat = x_nchw.reshape(N, Cin, HW).astype(mxu_dtype)      # NCHW kept: free reshape

    # Lane-dense pooled store is legal if the block's last dim is a multiple of 128
    # (or the block covers the whole array).
    post_lane_dense = bool(apply_pool and ((Nb * Ho * Wo) % 128 == 0 or Nb == N))

    kern = partial(_encoder_kernel, K=K, P=P, H=H, W=W, HW=HW, Nb=Nb, pad0=pad0,
                   apply_pool=apply_pool, post_lane_dense=post_lane_dense)

    grid = (N // Nb,)
    in_specs = [
        pl.BlockSpec((Nb, Cin, HW), lambda g: (g, 0, 0)),
        pl.BlockSpec((K * K, 1, L), lambda g: (0, 0, 0)),
        pl.BlockSpec((Cout, K * K * Cin), lambda g: (0, 0)),
        pl.BlockSpec((Cout, 1), lambda g: (0, 0)),
        pl.BlockSpec((Nb, 2 * Cout, 1), lambda g: (g, 0, 0)),
    ]
    inputs = [x_flat, masks, w2, bias, film]

    pre_sds = jax.ShapeDtypeStruct((N, Cout, HW), out_dtype)
    pre_spec = pl.BlockSpec((Nb, Cout, HW), lambda g: (g, 0, 0))
    scratch = [pltpu.VMEM((Cin, padL), mxu_dtype)]
    cparams = pltpu.CompilerParams(dimension_semantics=("parallel",))

    if apply_pool:
        # Even/odd column picker for the 2x2 max: first Wo columns pick even j,
        # last Wo columns pick odd j.  Size is linear in W (not HW*Ho*Wo).
        sel = np.zeros((W, 2 * Wo), np.float32)
        for jo in range(Wo):
            sel[2 * jo, jo] = 1.0
            sel[2 * jo + 1, Wo + jo] = 1.0
        inputs.append(jnp.asarray(sel))
        in_specs.append(pl.BlockSpec((W, 2 * Wo), lambda g: (0, 0)))

        if post_lane_dense:
            post_sds = jax.ShapeDtypeStruct((Cout, N * Ho * Wo), out_dtype)
            post_spec = pl.BlockSpec((Cout, Nb * Ho * Wo), lambda g: (0, g))
        else:
            post_sds = jax.ShapeDtypeStruct((N, Cout, Ho * Wo), out_dtype)
            post_spec = pl.BlockSpec((Nb, Cout, Ho * Wo), lambda g: (g, 0, 0))

        pre_flat, post_flat = pl.pallas_call(
            kern,
            out_shape=(pre_sds, post_sds),
            grid=grid,
            in_specs=in_specs,
            out_specs=(pre_spec, post_spec),
            scratch_shapes=scratch,
            compiler_params=cparams,
        )(*inputs)
        pre = pre_flat.reshape(N, Cout, H, W)
        if post_lane_dense:
            # Tiny un-permute of the pooled tensor (N*Cout*Ho*Wo elements).
            post = post_flat.reshape(Cout, N, Ho, Wo).transpose(1, 0, 2, 3)
        else:
            post = post_flat.reshape(N, Cout, Ho, Wo)
        return post, pre

    pre_flat = pl.pallas_call(
        kern,
        out_shape=pre_sds,
        grid=grid,
        in_specs=in_specs,
        out_specs=pre_spec,
        scratch_shapes=scratch,
        compiler_params=cparams,
    )(*inputs)
    pre = pre_flat.reshape(N, Cout, H, W)
    # nn.Identity pool: x_post_pool IS x_pre_pool (single writeback, no duplicate copy).
    return pre, pre


def encoder_reference(x_nchw, emb, params, *, kernel_size, padding, apply_pool):
    """Pure-JAX reference mirroring the assumed PyTorch forward."""
    eps = 1e-5
    w, b = params["conv_w"], params["conv_b"]
    Cout = w.shape[0]
    y = jax.lax.conv_general_dilated(
        x_nchw, w, window_strides=(1, 1),
        padding=[(padding, padding), (padding, padding)],
        dimension_numbers=("NCHW", "OIHW", "NCHW"))
    y = y + b[None, :, None, None]
    scale = params["bn_gamma"] / jnp.sqrt(params["bn_var"] + eps)
    shift = params["bn_beta"] - params["bn_mean"] * scale
    y = y * scale[None, :, None, None] + shift[None, :, None, None]
    y = jnp.maximum(y, 0.0)
    film = emb @ params["film_w"].T + params["film_b"]
    gamma = film[:, :Cout][:, :, None, None]
    beta = film[:, Cout:][:, :, None, None]
    pre = gamma * y + beta
    if apply_pool:
        N, C, H, W = pre.shape
        post = pre.reshape(N, C, H // 2, 2, W // 2, 2).max(axis=(3, 5))
    else:
        post = pre
    return post, pre


if __name__ == "__main__":
    # Small, deterministic configuration (N=4 so the grid has 2 parallel steps and
    # the batch-fold onto lanes is exercised with Nb=2 images per step).
    N, Cin, Cout, H, W = 4, 4, 8, 16, 16
    K, P, E = 3, 1, 16

    key = jax.random.PRNGKey(0)
    keys = jax.random.split(key, 10)
    params = {
        "conv_w": 0.1 * jax.random.normal(keys[0], (Cout, Cin, K, K), jnp.float32),
        "conv_b": 0.1 * jax.random.normal(keys[1], (Cout,), jnp.float32),
        "bn_gamma": 1.0 + 0.1 * jax.random.normal(keys[2], (Cout,), jnp.float32),
        "bn_beta": 0.1 * jax.random.normal(keys[3], (Cout,), jnp.float32),
        "bn_mean": 0.1 * jax.random.normal(keys[4], (Cout,), jnp.float32),
        "bn_var": 0.5 + jax.random.uniform(keys[5], (Cout,), jnp.float32),
        "film_w": 0.1 * jax.random.normal(keys[6], (2 * Cout, E), jnp.float32),
        "film_b": 0.1 * jax.random.normal(keys[7], (2 * Cout,), jnp.float32),
    }
    x = jax.random.normal(keys[8], (N, Cin, H, W), jnp.float32)
    emb = jax.random.normal(keys[9], (N, E), jnp.float32)

    # f32 MXU path: exact parity with the reference.
    for apply_pool in (True, False):
        post, pre = encoder_forward(x, emb, params, kernel_size=K, padding=P,
                                    apply_pool=apply_pool)
        jax.block_until_ready((post, pre))
        post_ref, pre_ref = encoder_reference(x, emb, params, kernel_size=K,
                                              padding=P, apply_pool=apply_pool)
        np.testing.assert_allclose(np.asarray(pre), np.asarray(pre_ref),
                                   rtol=1e-4, atol=1e-4)
        np.testing.assert_allclose(np.asarray(post), np.asarray(post_ref),
                                   rtol=1e-4, atol=1e-4)

    # bf16 MXU-feeding path (v6e/v7x feedback): f32 accumulation, looser tolerance.
    post, pre = encoder_forward(x, emb, params, kernel_size=K, padding=P,
                                apply_pool=True, mxu_dtype=jnp.bfloat16)
    jax.block_until_ready((post, pre))
    post_ref, pre_ref = encoder_reference(x, emb, params, kernel_size=K,
                                          padding=P, apply_pool=True)
    np.testing.assert_allclose(np.asarray(pre), np.asarray(pre_ref),
                               rtol=5e-2, atol=5e-2)
    np.testing.assert_allclose(np.asarray(post), np.asarray(post_ref),
                               rtol=5e-2, atol=5e-2)

    print("KERNEL_OK")
</pallas_src>

<mosaic_0001>
module attributes {stable_mosaic.version = 11 : i64} {
  func.func @_encoder_kernel(%arg0: i32, %arg1: memref<2x4x256xf32, #tpu.memory_space<vmem>>, %arg2: memref<9x1x512xf32, #tpu.memory_space<vmem>>, %arg3: memref<8x36xf32, #tpu.memory_space<vmem>>, %arg4: memref<8x1xf32, #tpu.memory_space<vmem>>, %arg5: memref<2x16x1xf32, #tpu.memory_space<vmem>>, %arg6: memref<16x16xf32, #tpu.memory_space<vmem>>, %arg7: memref<2x8x256xf32, #tpu.memory_space<vmem>>, %arg8: memref<8x128xf32, #tpu.memory_space<vmem>>, %arg9: memref<4x768xf32, #tpu.memory_space<vmem>>) attributes {dimension_semantics = [#tpu.dimension_semantics<parallel>], iteration_bounds = array<i64: 2>, scalar_prefetch = 0 : i64, scratch_operands = 1 : i64, tpu.core_type = #tpu.core_type<tc>, window_params = [{transform_indices = @transform_0, window_bounds = array<i64: 2, 4, 256>}, {pipeline_mode = #tpu.pipeline_mode<synchronous>, transform_indices = @transform_1, window_bounds = array<i64: 9, 1, 512>}, {pipeline_mode = #tpu.pipeline_mode<synchronous>, transform_indices = @transform_2, window_bounds = array<i64: 8, 36>}, {pipeline_mode = #tpu.pipeline_mode<synchronous>, transform_indices = @transform_3, window_bounds = array<i64: 8, 1>}, {transform_indices = @transform_4, window_bounds = array<i64: 2, 16, 1>}, {pipeline_mode = #tpu.pipeline_mode<synchronous>, transform_indices = @transform_5, window_bounds = array<i64: 16, 16>}, {transform_indices = @transform_6, window_bounds = array<i64: 2, 8, 256>}, {transform_indices = @transform_7, window_bounds = array<i64: 8, 128>}]} {
    %cst = arith.constant 0.000000e+00 : f32
    %0 = vector.broadcast %cst : f32 to vector<4x128xf32>
    %c0 = arith.constant 0 : index
    %c0_0 = arith.constant 0 : index
    %1 = vector.load %arg9[%c0, %c0_0] : memref<4x768xf32, #tpu.memory_space<vmem>>, vector<4x128xf32>
    tpu.vector_store %arg9[%c0, %c0_0], %0 {strides = array<i32>} : memref<4x768xf32, #tpu.memory_space<vmem>>, vector<4x128xf32>,
    %cst_1 = arith.constant 0.000000e+00 : f32
    %2 = vector.broadcast %cst_1 : f32 to vector<4x128xf32>
    %c0_2 = arith.constant 0 : index
    %c640 = arith.constant 640 : index
    %3 = vector.load %arg9[%c0_2, %c640] : memref<4x768xf32, #tpu.memory_space<vmem>>, vector<4x128xf32>
    tpu.vector_store %arg9[%c0_2, %c640], %2 {strides = array<i32>} : memref<4x768xf32, #tpu.memory_space<vmem>>, vector<4x128xf32>,
    %c0_3 = arith.constant 0 : index
    %c0_4 = arith.constant 0 : index
    %c0_5 = arith.constant 0 : index
    %4 = vector.load %arg1[%c0_3, %c0_4, %c0_5] : memref<2x4x256xf32, #tpu.memory_space<vmem>>, vector<1x4x256xf32>
    %5 = vector.shape_cast %4 : vector<1x4x256xf32> to vector<4x256xf32>
    %c0_6 = arith.constant 0 : index
    %c128 = arith.constant 128 : index
    %6 = vector.load %arg9[%c0_6, %c128] : memref<4x768xf32, #tpu.memory_space<vmem>>, vector<4x256xf32>
    tpu.vector_store %arg9[%c0_6, %c128], %5 {strides = array<i32>} : memref<4x768xf32, #tpu.memory_space<vmem>>, vector<4x256xf32>,
    %c1 = arith.constant 1 : index
    %c0_7 = arith.constant 0 : index
    %c0_8 = arith.constant 0 : index
    %7 = vector.load %arg1[%c1, %c0_7, %c0_8] : memref<2x4x256xf32, #tpu.memory_space<vmem>>, vector<1x4x256xf32>
    %8 = vector.shape_cast %7 : vector<1x4x256xf32> to vector<4x256xf32>
    %c0_9 = arith.constant 0 : index
    %c384 = arith.constant 384 : index
    %9 = vector.load %arg9[%c0_9, %c384] : memref<4x768xf32, #tpu.memory_space<vmem>>, vector<4x256xf32>
    tpu.vector_store %arg9[%c0_9, %c384], %8 {strides = array<i32>} : memref<4x768xf32, #tpu.memory_space<vmem>>, vector<4x256xf32>,
    %c0_10 = arith.constant 0 : index
    %c111 = arith.constant 111 : index
    %10 = vector.load %arg9[%c0_10, %c111] : memref<4x768xf32, #tpu.memory_space<vmem>>, vector<4x512xf32>
    %c0_11 = arith.constant 0 : index
    %c0_12 = arith.constant 0 : index
    %c0_13 = arith.constant 0 : index
    %11 = vector.load %arg2[%c0_11, %c0_12, %c0_13] : memref<9x1x512xf32, #tpu.memory_space<vmem>>, vector<1x1x512xf32>
    %12 = vector.shape_cast %11 : vector<1x1x512xf32> to vector<1x512xf32>
    %13 = vector.broadcast %12 : vector<1x512xf32> to vector<4x512xf32>
    %14 = arith.mulf %10, %13 : vector<4x512xf32>
    %c0_14 = arith.constant 0 : index
    %c112 = arith.constant 112 : index
    %15 = vector.load %arg9[%c0_14, %c112] : memref<4x768xf32, #tpu.memory_space<vmem>>, vector<4x512xf32>
    %c1_15 = arith.constant 1 : index
    %c0_16 = arith.constant 0 : index
    %c0_17 = arith.constant 0 : index
    %16 = vector.load %arg2[%c1_15, %c0_16, %c0_17] : memref<9x1x512xf32, #tpu.memory_space<vmem>>, vector<1x1x512xf32>
    %17 = vector.shape_cast %16 : vector<1x1x512xf32> to vector<1x512xf32>
    %18 = vector.broadcast %17 : vector<1x512xf32> to vector<4x512xf32>
    %19 = arith.mulf %15, %18 : vector<4x512xf32>
    %c0_18 = arith.constant 0 : index
    %c113 = arith.constant 113 : index
    %20 = vector.load %arg9[%c0_18, %c113] : memref<4x768xf32, #tpu.memory_space<vmem>>, vector<4x512xf32>
    %c2 = arith.constant 2 : index
    %c0_19 = arith.constant 0 : index
    %c0_20 = arith.constant 0 : index
    %21 = vector.load %arg2[%c2, %c0_19, %c0_20] : memref<9x1x512xf32, #tpu.memory_space<vmem>>, vector<1x1x512xf32>
    %22 = vector.shape_cast %21 : vector<1x1x512xf32> to vector<1x512xf32>
    %23 = vector.broadcast %22 : vector<1x512xf32> to vector<4x512xf32>
    %24 = arith.mulf %20, %23 : vector<4x512xf32>
    %c0_21 = arith.constant 0 : index
    %c127 = arith.constant 127 : index
    %25 = vector.load %arg9[%c0_21, %c127] : memref<4x768xf32, #tpu.memory_space<vmem>>, vector<4x512xf32>
    %c3 = arith.constant 3 : index
    %c0_22 = arith.constant 0 : index
    %c0_23 = arith.constant 0 : index
    %26 = vector.load %arg2[%c3, %c0_22, %c0_23] : memref<9x1x512xf32, #tpu.memory_space<vmem>>, vector<1x1x512xf32>
    %27 = vector.shape_cast %26 : vector<1x1x512xf32> to vector<1x512xf32>
    %28 = vector.broadcast %27 : vector<1x512xf32> to vector<4x512xf32>
    %29 = arith.mulf %25, %28 : vector<4x512xf32>
    %c0_24 = arith.constant 0 : index
    %c128_25 = arith.constant 128 : index
    %30 = vector.load %arg9[%c0_24, %c128_25] : memref<4x768xf32, #tpu.memory_space<vmem>>, vector<4x512xf32>
    %c4 = arith.constant 4 : index
    %c0_26 = arith.constant 0 : index
    %c0_27 = arith.constant 0 : index
    %31 = vector.load %arg2[%c4, %c0_26, %c0_27] : memref<9x1x512xf32, #tpu.memory_space<vmem>>, vector<1x1x512xf32>
    %32 = vector.shape_cast %31 : vector<1x1x512xf32> to vector<1x512xf32>
    %33 = vector.broadcast %32 : vector<1x512xf32> to vector<4x512xf32>
    %34 = arith.mulf %30, %33 : vector<4x512xf32>
    %c0_28 = arith.constant 0 : index
    %c129 = arith.constant 129 : index
    %35 = vector.load %arg9[%c0_28, %c129] : memref<4x768xf32, #tpu.memory_space<vmem>>, vector<4x512xf32>
    %c5 = arith.constant 5 : index
    %c0_29 = arith.constant 0 : index
    %c0_30 = arith.constant 0 : index
    %36 = vector.load %arg2[%c5, %c0_29, %c0_30] : memref<9x1x512xf32, #tpu.memory_space<vmem>>, vector<1x1x512xf32>
    %37 = vector.shape_cast %36 : vector<1x1x512xf32> to vector<1x512xf32>
    %38 = vector.broadcast %37 : vector<1x512xf32> to vector<4x512xf32>
    %39 = arith.mulf %35, %38 : vector<4x512xf32>
    %c0_31 = arith.constant 0 : index
    %c143 = arith.constant 143 : index
    %40 = vector.load %arg9[%c0_31, %c143] : memref<4x768xf32, #tpu.memory_space<vmem>>, vector<4x512xf32>
    %c6 = arith.constant 6 : index
    %c0_32 = arith.constant 0 : index
    %c0_33 = arith.constant 0 : index
    %41 = vector.load %arg2[%c6, %c0_32, %c0_33] : memref<9x1x512xf32, #tpu.memory_space<vmem>>, vector<1x1x512xf32>
    %42 = vector.shape_cast %41 : vector<1x1x512xf32> to vector<1x512xf32>
    %43 = vector.broadcast %42 : vector<1x512xf32> to vector<4x512xf32>
    %44 = arith.mulf %40, %43 : vector<4x512xf32>
    %c0_34 = arith.constant 0 : index
    %c144 = arith.constant 144 : index
    %45 = vector.load %arg9[%c0_34, %c144] : memref<4x768xf32, #tpu.memory_space<vmem>>, vector<4x512xf32>
    %c7 = arith.constant 7 : index
    %c0_35 = arith.constant 0 : index
    %c0_36 = arith.constant 0 : index
    %46 = vector.load %arg2[%c7, %c0_35, %c0_36] : memref<9x1x512xf32, #tpu.memory_space<vmem>>, vector<1x1x512xf32>
    %47 = vector.shape_cast %46 : vector<1x1x512xf32> to vector<1x512xf32>
    %48 = vector.broadcast %47 : vector<1x512xf32> to vector<4x512xf32>
    %49 = arith.mulf %45, %48 : vector<4x512xf32>
    %c0_37 = arith.constant 0 : index
    %c145 = arith.constant 145 : index
    %50 = vector.load %arg9[%c0_37, %c145] : memref<4x768xf32, #tpu.memory_space<vmem>>, vector<4x512xf32>
    %c8 = arith.constant 8 : index
    %c0_38 = arith.constant 0 : index
    %c0_39 = arith.constant 0 : index
    %51 = vector.load %arg2[%c8, %c0_38, %c0_39] : memref<9x1x512xf32, #tpu.memory_space<vmem>>, vector<1x1x512xf32>
    %52 = vector.shape_cast %51 : vector<1x1x512xf32> to vector<1x512xf32>
    %53 = vector.broadcast %52 : vector<1x512xf32> to vector<4x512xf32>
    %54 = arith.mulf %50, %53 : vector<4x512xf32>
    %55 = tpu.concatenate %14, %19, %24, %29, %34, %39, %44, %49, %54 in 0 : vector<4x512xf32>, vector<4x512xf32>, vector<4x512xf32>, vector<4x512xf32>, vector<4x512xf32>, vector<4x512xf32>, vector<4x512xf32>, vector<4x512xf32>, vector<4x512xf32> -> vector<36x512xf32>
    %c0_40 = arith.constant 0 : index
    %c0_41 = arith.constant 0 : index
    %56 = vector.load %arg3[%c0_40, %c0_41] : memref<8x36xf32, #tpu.memory_space<vmem>>, vector<8x36xf32>
    %cst_42 = arith.constant dense<0.000000e+00> : vector<8x512xf32>
    %57 = tpu.matmul %56, %55, %cst_42 {dimension_numbers = #tpu.dot_dimension_numbers<[1], [0], [0], [1], [0, 0, 1, 1], [], []>} : vector<8x36xf32>, vector<36x512xf32>, vector<8x512xf32> -> vector<8x512xf32>
    %c0_43 = arith.constant 0 : index
    %c0_44 = arith.constant 0 : index
    %58 = vector.load %arg4[%c0_43, %c0_44] : memref<8x1xf32, #tpu.memory_space<vmem>>, vector<8x1xf32>
    %59 = vector.broadcast %58 : vector<8x1xf32> to vector<8x512xf32>
    %60 = arith.addf %57, %59 : vector<8x512xf32>
    %cst_45 = arith.constant 0.000000e+00 : f32
    %61 = vector.broadcast %cst_45 : f32 to vector<8x512xf32>
    %62 = arith.maximumf %60, %61 : vector<8x512xf32>
    %c0_46 = arith.constant 0 : index
    %c0_47 = arith.constant 0 : index
    %c0_48 = arith.constant 0 : index
    %63 = vector.load %arg5[%c0_46, %c0_47, %c0_48] : memref<2x16x1xf32, #tpu.memory_space<vmem>>, vector<1x16x1xf32>
    %64 = vector.shape_cast %63 : vector<1x16x1xf32> to vector<16x1xf32>
    %65 = vector.extract_strided_slice %64 {offsets = [0, 0], sizes = [8, 1], strides = [1, 1]} : vector<16x1xf32> to vector<8x1xf32>
    %66 = vector.extract_strided_slice %64 {offsets = [8, 0], sizes = [8, 1], strides = [1, 1]} : vector<16x1xf32> to vector<8x1xf32>
    %67 = vector.extract_strided_slice %62 {offsets = [0, 0], sizes = [8, 256], strides = [1, 1]} : vector<8x512xf32> to vector<8x256xf32>
    %68 = vector.broadcast %65 : vector<8x1xf32> to vector<8x256xf32>
    %69 = arith.mulf %67, %68 : vector<8x256xf32>
    %70 = vector.broadcast %66 : vector<8x1xf32> to vector<8x256xf32>
    %71 = arith.addf %69, %70 : vector<8x256xf32>
    %c0_49 = arith.constant 0 : index
    %c0_50 = arith.constant 0 : index
    %c0_51 = arith.constant 0 : index
    %72 = vector.load %arg7[%c0_49, %c0_50, %c0_51] : memref<2x8x256xf32, #tpu.memory_space<vmem>>, vector<1x8x256xf32>
    %73 = vector.shape_cast %72 : vector<1x8x256xf32> to vector<8x256xf32>
    %74 = vector.shape_cast %71 : vector<8x256xf32> to vector<1x8x256xf32>
    tpu.vector_store %arg7[%c0_49, %c0_50, %c0_51], %74 {strides = array<i32>} : memref<2x8x256xf32, #tpu.memory_space<vmem>>, vector<1x8x256xf32>,
    %c0_52 = arith.constant 0 : index
    %c0_53 = arith.constant 0 : index
    %75 = vector.load %arg6[%c0_52, %c0_53] : memref<16x16xf32, #tpu.memory_space<vmem>>, vector<16x16xf32>
    %76 = vector.extract_strided_slice %71 {offsets = [0, 0], sizes = [8, 16], strides = [1, 1]} : vector<8x256xf32> to vector<8x16xf32>
    %77 = vector.extract_strided_slice %71 {offsets = [0, 16], sizes = [8, 16], strides = [1, 1]} : vector<8x256xf32> to vector<8x16xf32>
    %78 = arith.maximumf %76, %77 : vector<8x16xf32>
    %cst_54 = arith.constant dense<0.000000e+00> : vector<8x16xf32>
    %79 = tpu.matmul %78, %75, %cst_54 {dimension_numbers = #tpu.dot_dimension_numbers<[1], [0], [0], [1], [0, 0, 1, 1], [], []>} : vector<8x16xf32>, vector<16x16xf32>, vector<8x16xf32> -> vector<8x16xf32>
    %80 = vector.extract_strided_slice %79 {offsets = [0, 0], sizes = [8, 8], strides = [1, 1]} : vector<8x16xf32> to vector<8x8xf32>
    %81 = vector.extract_strided_slice %79 {offsets = [0, 8], sizes = [8, 8], strides = [1, 1]} : vector<8x16xf32> to vector<8x8xf32>
    %82 = arith.maximumf %80, %81 : vector<8x8xf32>
    %83 = vector.extract_strided_slice %71 {offsets = [0, 32], sizes = [8, 16], strides = [1, 1]} : vector<8x256xf32> to vector<8x16xf32>
    %84 = vector.extract_strided_slice %71 {offsets = [0, 48], sizes = [8, 16], strides = [1, 1]} : vector<8x256xf32> to vector<8x16xf32>
    %85 = arith.maximumf %83, %84 : vector<8x16xf32>
    %cst_55 = arith.constant dense<0.000000e+00> : vector<8x16xf32>
    %86 = tpu.matmul %85, %75, %cst_55 {dimension_numbers = #tpu.dot_dimension_numbers<[1], [0], [0], [1], [0, 0, 1, 1], [], []>} : vector<8x16xf32>, vector<16x16xf32>, vector<8x16xf32> -> vector<8x16xf32>
    %87 = vector.extract_strided_slice %86 {offsets = [0, 0], sizes = [8, 8], strides = [1, 1]} : vector<8x16xf32> to vector<8x8xf32>
    %88 = vector.extract_strided_slice %86 {offsets = [0, 8], sizes = [8, 8], strides = [1, 1]} : vector<8x16xf32> to vector<8x8xf32>
    %89 = arith.maximumf %87, %88 : vector<8x8xf32>
    %90 = vector.extract_strided_slice %71 {offsets = [0, 64], sizes = [8, 16], strides = [1, 1]} : vector<8x256xf32> to vector<8x16xf32>
    %91 = vector.extract_strided_slice %71 {offsets = [0, 80], sizes = [8, 16], strides = [1, 1]} : vector<8x256xf32> to vector<8x16xf32>
    %92 = arith.maximumf %90, %91 : vector<8x16xf32>
    %cst_56 = arith.constant dense<0.000000e+00> : vector<8x16xf32>
    %93 = tpu.matmul %92, %75, %cst_56 {dimension_numbers = #tpu.dot_dimension_numbers<[1], [0], [0], [1], [0, 0, 1, 1], [], []>} : vector<8x16xf32>, vector<16x16xf32>, vector<8x16xf32> -> vector<8x16xf32>
    %94 = vector.extract_strided_slice %93 {offsets = [0, 0], sizes = [8, 8], strides = [1, 1]} : vector<8x16xf32> to vector<8x8xf32>
    %95 = vector.extract_strided_slice %93 {offsets = [0, 8], sizes = [8, 8], strides = [1, 1]} : vector<8x16xf32> to vector<8x8xf32>
    %96 = arith.maximumf %94, %95 : vector<8x8xf32>
    %97 = vector.extract_strided_slice %71 {offsets = [0, 96], sizes = [8, 16], strides = [1, 1]} : vector<8x256xf32> to vector<8x16xf32>
    %98 = vector.extract_strided_slice %71 {offsets = [0, 112], sizes = [8, 16], strides = [1, 1]} : vector<8x256xf32> to vector<8x16xf32>
    %99 = arith.maximumf %97, %98 : vector<8x16xf32>
    %cst_57 = arith.constant dense<0.000000e+00> : vector<8x16xf32>
    %100 = tpu.matmul %99, %75, %cst_57 {dimension_numbers = #tpu.dot_dimension_numbers<[1], [0], [0], [1], [0, 0, 1, 1], [], []>} : vector<8x16xf32>, vector<16x16xf32>, vector<8x16xf32> -> vector<8x16xf32>
    %101 = vector.extract_strided_slice %100 {offsets = [0, 0], sizes = [8, 8], strides = [1, 1]} : vector<8x16xf32> to vector<8x8xf32>
    %102 = vector.extract_strided_slice %100 {offsets = [0, 8], sizes = [8, 8], strides = [1, 1]} : vector<8x16xf32> to vector<8x8xf32>
    %103 = arith.maximumf %101, %102 : vector<8x8xf32>
    %104 = vector.extract_strided_slice %71 {offsets = [0, 128], sizes = [8, 16], strides = [1, 1]} : vector<8x256xf32> to vector<8x16xf32>
    %105 = vector.extract_strided_slice %71 {offsets = [0, 144], sizes = [8, 16], strides = [1, 1]} : vector<8x256xf32> to vector<8x16xf32>
    %106 = arith.maximumf %104, %105 : vector<8x16xf32>
    %cst_58 = arith.constant dense<0.000000e+00> : vector<8x16xf32>
    %107 = tpu.matmul %106, %75, %cst_58 {dimension_numbers = #tpu.dot_dimension_numbers<[1], [0], [0], [1], [0, 0, 1, 1], [], []>} : vector<8x16xf32>, vector<16x16xf32>, vector<8x16xf32> -> vector<8x16xf32>
    %108 = vector.extract_strided_slice %107 {offsets = [0, 0], sizes = [8, 8], strides = [1, 1]} : vector<8x16xf32> to vector<8x8xf32>
    %109 = vector.extract_strided_slice %107 {offsets = [0, 8], sizes = [8, 8], strides = [1, 1]} : vector<8x16xf32> to vector<8x8xf32>
    %110 = arith.maximumf %108, %109 : vector<8x8xf32>
    %111 = vector.extract_strided_slice %71 {offsets = [0, 160], sizes = [8, 16], strides = [1, 1]} : vector<8x256xf32> to vector<8x16xf32>
    %112 = vector.extract_strided_slice %71 {offsets = [0, 176], sizes = [8, 16], strides = [1, 1]} : vector<8x256xf32> to vector<8x16xf32>
    %113 = arith.maximumf %111, %112 : vector<8x16xf32>
    %cst_59 = arith.constant dense<0.000000e+00> : vector<8x16xf32>
    %114 = tpu.matmul %113, %75, %cst_59 {dimension_numbers = #tpu.dot_dimension_numbers<[1], [0], [0], [1], [0, 0, 1, 1], [], []>} : vector<8x16xf32>, vector<16x16xf32>, vector<8x16xf32> -> vector<8x16xf32>
    %115 = vector.extract_strided_slice %114 {offsets = [0, 0], sizes = [8, 8], strides = [1, 1]} : vector<8x16xf32> to vector<8x8xf32>
    %116 = vector.extract_strided_slice %114 {offsets = [0, 8], sizes = [8, 8], strides = [1, 1]} : vector<8x16xf32> to vector<8x8xf32>
    %117 = arith.maximumf %115, %116 : vector<8x8xf32>
    %118 = vector.extract_strided_slice %71 {offsets = [0, 192], sizes = [8, 16], strides = [1, 1]} : vector<8x256xf32> to vector<8x16xf32>
    %119 = vector.extract_strided_slice %71 {offsets = [0, 208], sizes = [8, 16], strides = [1, 1]} : vector<8x256xf32> to vector<8x16xf32>
    %120 = arith.maximumf %118, %119 : vector<8x16xf32>
    %cst_60 = arith.constant dense<0.000000e+00> : vector<8x16xf32>
    %121 = tpu.matmul %120, %75, %cst_60 {dimension_numbers = #tpu.dot_dimension_numbers<[1], [0], [0], [1], [0, 0, 1, 1], [], []>} : vector<8x16xf32>, vector<16x16xf32>, vector<8x16xf32> -> vector<8x16xf32>
    %122 = vector.extract_strided_slice %121 {offsets = [0, 0], sizes = [8, 8], strides = [1, 1]} : vector<8x16xf32> to vector<8x8xf32>
    %123 = vector.extract_strided_slice %121 {offsets = [0, 8], sizes = [8, 8], strides = [1, 1]} : vector<8x16xf32> to vector<8x8xf32>
    %124 = arith.maximumf %122, %123 : vector<8x8xf32>
    %125 = vector.extract_strided_slice %71 {offsets = [0, 224], sizes = [8, 16], strides = [1, 1]} : vector<8x256xf32> to vector<8x16xf32>
    %126 = vector.extract_strided_slice %71 {offsets = [0, 240], sizes = [8, 16], strides = [1, 1]} : vector<8x256xf32> to vector<8x16xf32>
    %127 = arith.maximumf %125, %126 : vector<8x16xf32>
    %cst_61 = arith.constant dense<0.000000e+00> : vector<8x16xf32>
    %128 = tpu.matmul %127, %75, %cst_61 {dimension_numbers = #tpu.dot_dimension_numbers<[1], [0], [0], [1], [0, 0, 1, 1], [], []>} : vector<8x16xf32>, vector<16x16xf32>, vector<8x16xf32> -> vector<8x16xf32>
    %129 = vector.extract_strided_slice %128 {offsets = [0, 0], sizes = [8, 8], strides = [1, 1]} : vector<8x16xf32> to vector<8x8xf32>
    %130 = vector.extract_strided_slice %128 {offsets = [0, 8], sizes = [8, 8], strides = [1, 1]} : vector<8x16xf32> to vector<8x8xf32>
    %131 = arith.maximumf %129, %130 : vector<8x8xf32>
    %132 = tpu.concatenate %82, %89, %96, %103, %110, %117, %124, %131 in 1 : vector<8x8xf32>, vector<8x8xf32>, vector<8x8xf32>, vector<8x8xf32>, vector<8x8xf32>, vector<8x8xf32>, vector<8x8xf32>, vector<8x8xf32> -> vector<8x64xf32>
    %c1_62 = arith.constant 1 : index
    %c0_63 = arith.constant 0 : index
    %c0_64 = arith.constant 0 : index
    %133 = vector.load %arg5[%c1_62, %c0_63, %c0_64] : memref<2x16x1xf32, #tpu.memory_space<vmem>>, vector<1x16x1xf32>
    %134 = vector.shape_cast %133 : vector<1x16x1xf32> to vector<16x1xf32>
    %135 = vector.extract_strided_slice %134 {offsets = [0, 0], sizes = [8, 1], strides = [1, 1]} : vector<16x1xf32> to vector<8x1xf32>
    %136 = vector.extract_strided_slice %134 {offsets = [8, 0], sizes = [8, 1], strides = [1, 1]} : vector<16x1xf32> to vector<8x1xf32>
    %137 = vector.extract_strided_slice %62 {offsets = [0, 256], sizes = [8, 256], strides = [1, 1]} : vector<8x512xf32> to vector<8x256xf32>
    %138 = vector.broadcast %135 : vector<8x1xf32> to vector<8x256xf32>
    %139 = arith.mulf %137, %138 : vector<8x256xf32>
    %140 = vector.broadcast %136 : vector<8x1xf32> to vector<8x256xf32>
    %141 = arith.addf %139, %140 : vector<8x256xf32>
    %c1_65 = arith.constant 1 : index
    %c0_66 = arith.constant 0 : index
    %c0_67 = arith.constant 0 : index
    %142 = vector.load %arg7[%c1_65, %c0_66, %c0_67] : memref<2x8x256xf32, #tpu.memory_space<vmem>>, vector<1x8x256xf32>
    %143 = vector.shape_cast %142 : vector<1x8x256xf32> to vector<8x256xf32>
    %144 = vector.shape_cast %141 : vector<8x256xf32> to vector<1x8x256xf32>
    tpu.vector_store %arg7[%c1_65, %c0_66, %c0_67], %144 {strides = array<i32>} : memref<2x8x256xf32, #tpu.memory_space<vmem>>, vector<1x8x256xf32>,
    %c0_68 = arith.constant 0 : index
    %c0_69 = arith.constant 0 : index
    %145 = vector.load %arg6[%c0_68, %c0_69] : memref<16x16xf32, #tpu.memory_space<vmem>>, vector<16x16xf32>
    %146 = vector.extract_strided_slice %141 {offsets = [0, 0], sizes = [8, 16], strides = [1, 1]} : vector<8x256xf32> to vector<8x16xf32>
    %147 = vector.extract_strided_slice %141 {offsets = [0, 16], sizes = [8, 16], strides = [1, 1]} : vector<8x256xf32> to vector<8x16xf32>
    %148 = arith.maximumf %146, %147 : vector<8x16xf32>
    %cst_70 = arith.constant dense<0.000000e+00> : vector<8x16xf32>
    %149 = tpu.matmul %148, %145, %cst_70 {dimension_numbers = #tpu.dot_dimension_numbers<[1], [0], [0], [1], [0, 0, 1, 1], [], []>} : vector<8x16xf32>, vector<16x16xf32>, vector<8x16xf32> -> vector<8x16xf32>
    %150 = vector.extract_strided_slice %149 {offsets = [0, 0], sizes = [8, 8], strides = [1, 1]} : vector<8x16xf32> to vector<8x8xf32>
    %151 = vector.extract_strided_slice %149 {offsets = [0, 8], sizes = [8, 8], strides = [1, 1]} : vector<8x16xf32> to vector<8x8xf32>
    %152 = arith.maximumf %150, %151 : vector<8x8xf32>
    %153 = vector.extract_strided_slice %141 {offsets = [0, 32], sizes = [8, 16], strides = [1, 1]} : vector<8x256xf32> to vector<8x16xf32>
    %154 = vector.extract_strided_slice %141 {offsets = [0, 48], sizes = [8, 16], strides = [1, 1]} : vector<8x256xf32> to vector<8x16xf32>
    %155 = arith.maximumf %153, %154 : vector<8x16xf32>
    %cst_71 = arith.constant dense<0.000000e+00> : vector<8x16xf32>
    %156 = tpu.matmul %155, %145, %cst_71 {dimension_numbers = #tpu.dot_dimension_numbers<[1], [0], [0], [1], [0, 0, 1, 1], [], []>} : vector<8x16xf32>, vector<16x16xf32>, vector<8x16xf32> -> vector<8x16xf32>
    %157 = vector.extract_strided_slice %156 {offsets = [0, 0], sizes = [8, 8], strides = [1, 1]} : vector<8x16xf32> to vector<8x8xf32>
    %158 = vector.extract_strided_slice %156 {offsets = [0, 8], sizes = [8, 8], strides = [1, 1]} : vector<8x16xf32> to vector<8x8xf32>
    %159 = arith.maximumf %157, %158 : vector<8x8xf32>
    %160 = vector.extract_strided_slice %141 {offsets = [0, 64], sizes = [8, 16], strides = [1, 1]} : vector<8x256xf32> to vector<8x16xf32>
    %161 = vector.extract_strided_slice %141 {offsets = [0, 80], sizes = [8, 16], strides = [1, 1]} : vector<8x256xf32> to vector<8x16xf32>
    %162 = arith.maximumf %160, %161 : vector<8x16xf32>
    %cst_72 = arith.constant dense<0.000000e+00> : vector<8x16xf32>
    %163 = tpu.matmul %162, %145, %cst_72 {dimension_numbers = #tpu.dot_dimension_numbers<[1], [0], [0], [1], [0, 0, 1, 1], [], []>} : vector<8x16xf32>, vector<16x16xf32>, vector<8x16xf32> -> vector<8x16xf32>
    %164 = vector.extract_strided_slice %163 {offsets = [0, 0], sizes = [8, 8], strides = [1, 1]} : vector<8x16xf32> to vector<8x8xf32>
    %165 = vector.extract_strided_slice %163 {offsets = [0, 8], sizes = [8, 8], strides = [1, 1]} : vector<8x16xf32> to vector<8x8xf32>
    %166 = arith.maximumf %164, %165 : vector<8x8xf32>
    %167 = vector.extract_strided_slice %141 {offsets = [0, 96], sizes = [8, 16], strides = [1, 1]} : vector<8x256xf32> to vector<8x16xf32>
    %168 = vector.extract_strided_slice %141 {offsets = [0, 112], sizes = [8, 16], strides = [1, 1]} : vector<8x256xf32> to vector<8x16xf32>
    %169 = arith.maximumf %167, %168 : vector<8x16xf32>
    %cst_73 = arith.constant dense<0.000000e+00> : vector<8x16xf32>
    %170 = tpu.matmul %169, %145, %cst_73 {dimension_numbers = #tpu.dot_dimension_numbers<[1], [0], [0], [1], [0, 0, 1, 1], [], []>} : vector<8x16xf32>, vector<16x16xf32>, vector<8x16xf32> -> vector<8x16xf32>
    %171 = vector.extract_strided_slice %170 {offsets = [0, 0], sizes = [8, 8], strides = [1, 1]} : vector<8x16xf32> to vector<8x8xf32>
    %172 = vector.extract_strided_slice %170 {offsets = [0, 8], sizes = [8, 8], strides = [1, 1]} : vector<8x16xf32> to vector<8x8xf32>
    %173 = arith.maximumf %171, %172 : vector<8x8xf32>
    %174 = vector.extract_strided_slice %141 {offsets = [0, 128], sizes = [8, 16], strides = [1, 1]} : vector<8x256xf32> to vector<8x16xf32>
    %175 = vector.extract_strided_slice %141 {offsets = [0, 144], sizes = [8, 16], strides = [1, 1]} : vector<8x256xf32> to vector<8x16xf32>
    %176 = arith.maximumf %174, %175 : vector<8x16xf32>
    %cst_74 = arith.constant dense<0.000000e+00> : vector<8x16xf32>
    %177 = tpu.matmul %176, %145, %cst_74 {dimension_numbers = #tpu.dot_dimension_numbers<[1], [0], [0], [1], [0, 0, 1, 1], [], []>} : vector<8x16xf32>, vector<16x16xf32>, vector<8x16xf32> -> vector<8x16xf32>
    %178 = vector.extract_strided_slice %177 {offsets = [0, 0], sizes = [8, 8], strides = [1, 1]} : vector<8x16xf32> to vector<8x8xf32>
    %179 = vector.extract_strided_slice %177 {offsets = [0, 8], sizes = [8, 8], strides = [1, 1]} : vector<8x16xf32> to vector<8x8xf32>
    %180 = arith.maximumf %178, %179 : vector<8x8xf32>
    %181 = vector.extract_strided_slice %141 {offsets = [0, 160], sizes = [8, 16], strides = [1, 1]} : vector<8x256xf32> to vector<8x16xf32>
    %182 = vector.extract_strided_slice %141 {offsets = [0, 176], sizes = [8, 16], strides = [1, 1]} : vector<8x256xf32> to vector<8x16xf32>
    %183 = arith.maximumf %181, %182 : vector<8x16xf32>
    %cst_75 = arith.constant dense<0.000000e+00> : vector<8x16xf32>
    %184 = tpu.matmul %183, %145, %cst_75 {dimension_numbers = #tpu.dot_dimension_numbers<[1], [0], [0], [1], [0, 0, 1, 1], [], []>} : vector<8x16xf32>, vector<16x16xf32>, vector<8x16xf32> -> vector<8x16xf32>
    %185 = vector.extract_strided_slice %184 {offsets = [0, 0], sizes = [8, 8], strides = [1, 1]} : vector<8x16xf32> to vector<8x8xf32>
    %186 = vector.extract_strided_slice %184 {offsets = [0, 8], sizes = [8, 8], strides = [1, 1]} : vector<8x16xf32> to vector<8x8xf32>
    %187 = arith.maximumf %185, %186 : vector<8x8xf32>
    %188 = vector.extract_strided_slice %141 {offsets = [0, 192], sizes = [8, 16], strides = [1, 1]} : vector<8x256xf32> to vector<8x16xf32>
    %189 = vector.extract_strided_slice %141 {offsets = [0, 208], sizes = [8, 16], strides = [1, 1]} : vector<8x256xf32> to vector<8x16xf32>
    %190 = arith.maximumf %188, %189 : vector<8x16xf32>
    %cst_76 = arith.constant dense<0.000000e+00> : vector<8x16xf32>
    %191 = tpu.matmul %190, %145, %cst_76 {dimension_numbers = #tpu.dot_dimension_numbers<[1], [0], [0], [1], [0, 0, 1, 1], [], []>} : vector<8x16xf32>, vector<16x16xf32>, vector<8x16xf32> -> vector<8x16xf32>
    %192 = vector.extract_strided_slice %191 {offsets = [0, 0], sizes = [8, 8], strides = [1, 1]} : vector<8x16xf32> to vector<8x8xf32>
    %193 = vector.extract_strided_slice %191 {offsets = [0, 8], sizes = [8, 8], strides = [1, 1]} : vector<8x16xf32> to vector<8x8xf32>
    %194 = arith.maximumf %192, %193 : vector<8x8xf32>
    %195 = vector.extract_strided_slice %141 {offsets = [0, 224], sizes = [8, 16], strides = [1, 1]} : vector<8x256xf32> to vector<8x16xf32>
    %196 = vector.extract_strided_slice %141 {offsets = [0, 240], sizes = [8, 16], strides = [1, 1]} : vector<8x256xf32> to vector<8x16xf32>
    %197 = arith.maximumf %195, %196 : vector<8x16xf32>
    %cst_77 = arith.constant dense<0.000000e+00> : vector<8x16xf32>
    %198 = tpu.matmul %197, %145, %cst_77 {dimension_numbers = #tpu.dot_dimension_numbers<[1], [0], [0], [1], [0, 0, 1, 1], [], []>} : vector<8x16xf32>, vector<16x16xf32>, vector<8x16xf32> -> vector<8x16xf32>
    %199 = vector.extract_strided_slice %198 {offsets = [0, 0], sizes = [8, 8], strides = [1, 1]} : vector<8x16xf32> to vector<8x8xf32>
    %200 = vector.extract_strided_slice %198 {offsets = [0, 8], sizes = [8, 8], strides = [1, 1]} : vector<8x16xf32> to vector<8x8xf32>
    %201 = arith.maximumf %199, %200 : vector<8x8xf32>
    %202 = tpu.concatenate %152, %159, %166, %173, %180, %187, %194, %201 in 1 : vector<8x8xf32>, vector<8x8xf32>, vector<8x8xf32>, vector<8x8xf32>, vector<8x8xf32>, vector<8x8xf32>, vector<8x8xf32>, vector<8x8xf32> -> vector<8x64xf32>
    %203 = tpu.concatenate %132, %202 in 1 : vector<8x64xf32>, vector<8x64xf32> -> vector<8x128xf32>
    %c0_78 = arith.constant 0 : index
    %c0_79 = arith.constant 0 : index
    %204 = vector.load %arg8[%c0_78, %c0_79] : memref<8x128xf32, #tpu.memory_space<vmem>>, vector<8x128xf32>
    tpu.vector_store %arg8[%c0_78, %c0_79], %203 {strides = array<i32>} : memref<8x128xf32, #tpu.memory_space<vmem>>, vector<8x128xf32>,
    return
  }
  func.func @transform_0(%arg0: i32) -> (i32, i32, i32) {
    %c0_i32 = arith.constant 0 : i32
    %c0_i32_0 = arith.constant 0 : i32
    %c0_i32_1 = arith.constant 0 : i32
    return %arg0, %c0_i32, %c0_i32_0 : i32, i32, i32
  }
  func.func @transform_1(%arg0: i32) -> (i32, i32, i32) {
    %c0_i32 = arith.constant 0 : i32
    %c0_i32_0 = arith.constant 0 : i32
    %c0_i32_1 = arith.constant 0 : i32
    %c0_i32_2 = arith.constant 0 : i32
    return %c0_i32, %c0_i32_0, %c0_i32_1 : i32, i32, i32
  }
  func.func @transform_2(%arg0: i32) -> (i32, i32) {
    %c0_i32 = arith.constant 0 : i32
    %c0_i32_0 = arith.constant 0 : i32
    %c0_i32_1 = arith.constant 0 : i32
    return %c0_i32, %c0_i32_0 : i32, i32
  }
  func.func @transform_3(%arg0: i32) -> (i32, i32) {
    %c0_i32 = arith.constant 0 : i32
    %c0_i32_0 = arith.constant 0 : i32
    %c0_i32_1 = arith.constant 0 : i32
    return %c0_i32, %c0_i32_0 : i32, i32
  }
  func.func @transform_4(%arg0: i32) -> (i32, i32, i32) {
    %c0_i32 = arith.constant 0 : i32
    %c0_i32_0 = arith.constant 0 : i32
    %c0_i32_1 = arith.constant 0 : i32
    return %arg0, %c0_i32, %c0_i32_0 : i32, i32, i32
  }
  func.func @transform_5(%arg0: i32) -> (i32, i32) {
    %c0_i32 = arith.constant 0 : i32
    %c0_i32_0 = arith.constant 0 : i32
    %c0_i32_1 = arith.constant 0 : i32
    return %c0_i32, %c0_i32_0 : i32, i32
  }
  func.func @transform_6(%arg0: i32) -> (i32, i32, i32) {
    %c0_i32 = arith.constant 0 : i32
    %c0_i32_0 = arith.constant 0 : i32
    %c0_i32_1 = arith.constant 0 : i32
    return %arg0, %c0_i32, %c0_i32_0 : i32, i32, i32
  }
  func.func @transform_7(%arg0: i32) -> (i32, i32) {
    %c0_i32 = arith.constant 0 : i32
    %c0_i32_0 = arith.constant 0 : i32
    return %c0_i32, %arg0 : i32, i32
  }
}

</mosaic_0001>

<bundles_post_ra>
// kernel: tpu_custom_call.1
= control target key start
LH: loop header
LB: loop body
LE: loop exit
PB: predicated region body
PF: predicated region fallthrough
CT: control target
= control target key end

     0   :  { %13 = vsyncpa [#allocation4], 0  ;;  %s4179_s0 = inlined_call_operand.vmem [shape: f32[4,4,256], index: 0, kind: input, shape index: {}]   ;;  %s4180_s1 = inlined_call_operand.vmem [shape: f32[9,1,512], index: 1, kind: input, shape index: {}]   ;;  %s4181_s2 = inlined_call_operand.hbm [shape: f32[8,36], index: 2, kind: input, shape index: {}]   ;;  %s4182_s3 = inlined_call_operand.vmem [shape: f32[8,1], index: 3, kind: input, shape index: {}]   ;;  %s4183_s4 = inlined_call_operand.vmem [shape: f32[4,16,1], index: 4, kind: input, shape index: {}]   ;;  %s4184_s5 = inlined_call_operand.vmem [shape: f32[16,16], index: 5, kind: input, shape index: {}]   ;;  %s4185_s6 = inlined_call_operand.hbm [shape: f32[4,8,256], index: 6, kind: output, shape index: {0}]   ;;  %s4186_s7 = inlined_call_operand.hbm [shape: f32[8,256], index: 7, kind: output, shape index: {1}]  }
   0x1   :  { %14 = vsyncpa [#allocation5], 0 }
   0x2   :  { %16 = vsyncpa [#allocation5 + $0x1], 0 }
   0x3   :  { %17 = vsyncpa [#allocation8], 0 }
   0x4   :  { %19 = vsyncpa [#allocation8 + $0x1], 0  ;;  %s3393_s24 = smov 0   ;;  %s3395_s25 = smov 0  }
   0x5   :  { %s3397_s26 = smov 0   ;;  %s3399_s27 = smov 0  }
   0x6 LB: > { %s3414_s28 = sadd.s32 4294967295, %s3322_s27   ;;  %s2713_s29 = sadd.s32 4294967294, %s3322_s27   ;;  %s3322_s27 = sphi %s3399_s27, %s4202_s27   ;;  %s3318_s26 = sphi %s3397_s26, %s4201_s26   ;;  %s3314_s25 = sphi %s3395_s25, %s4200_s25   ;;  %s3310_s24 = sphi %s3393_s24, %s4199_s24  }
   0x7   : > { %s3418_s30 = sadd.s32 1, %s3322_s27   ;;  %s168_s8 = sadd.s32 1, %s3318_s26 }
   0x8   : > { %s165_s9 = ssub.s32 %s3322_s27, %s3418_s30  ;;  %p178_p0 = scmp.ne.s32.totalorder %s3318_s26, %s3314_s25 }
   0x9   : > { %p166_p1 = scmp.eq.s32.totalorder %s165_s9, 0  ;;  %p179_p2 = scmp.eq.s32.totalorder %s3414_s28, 1 }
   0xa   : > { %p184_p3 = scmp.ne.s32.totalorder %s3314_s25, %s3310_s24  ;;  %p185_p4 = scmp.eq.s32.totalorder %s2713_s29, 1 }
   0xb   : > { %s3429_s10 = scalar_select %p166_p1, %s3318_s26, %s168_s8  }
   0xc   : > { %p3431_p5 = por %p179_p2, %p178_p0  ;;  %p3435_p6 = por %p185_p4, %p184_p3 }
   0xd   : > { %p2714_p7 = scmp.ge.s32.totalorder %s3322_s27, 1  ;;  %p218_p8 = scmp.lt.s32.totalorder %s3322_s27, 3 }
   0xe   : > { %s4190_s11 = scalar_select %p3431_p5, 1, 0 }
   0xf   : > { %s4191_s12 = scalar_select %p3435_p6, 1, 0 }
  0x10   : > { %p4187_p9 = scmp.eq.s32.totalorder %s3414_s28, 0  ;;  %p3442_p10 = pnand %p2714_p7, %p218_p8 }
  0x11   : > { %s3324_s14 = smov [#allocation3]   ;;  %s3196_s19 = scalar_lea.hbm %s4181_s2, 128 }
  0x12   : > { %s4192_s13 = scalar_select %p3442_p10, 1, 0 }
  0x13   : > { %s234_s15 = sshll.u32 %s3324_s14, 4  ;;  %p3006_p11 = pneg %p3442_p10  ;;  %s235_s15 = int_to_ptr.vmem [resolvable:$true] %s234_s15 }
  0x14   : > { %p3197_p13 = scmp.ne.s32.totalorder %s4181_s2, %s3196_s19  ;;  %p3203_p3 = scmp.lt.u32.totalorder %s3196_s19, %s4181_s2 }
  0x15   : > { %p3450_p12 = pnand %p4187_p9, %p3006_p11 }
  0x17   : > { %p3198_p0 = pneg %p3450_p12 }
  0x19   : > { %p3199_p1 = pnand %p3198_p0, %p3197_p13 }
  0x1b   : > { %p3200_p2 = pneg %p3199_p1 }
  0x1d   : > { %p3205_p4 = pnand %p3203_p3, %p3200_p2 }
  0x1f   : > { %3208 = shalt.err (!%p3205_p4)
}
  0x20   : > { %s3209_s29 = scalar_lea.vmem %s235_s15, 128  ;;  %p3217_p9 = scmp.lt.s32.totalorder %s235_s15, %s235_s15 }
  0x21   : > { %p3210_p7 = scmp.ne.s32.totalorder %s235_s15, %s3209_s29  ;;  %p3218_p6 = scmp.lt.s32.totalorder %s3209_s29, %s3209_s29 }
  0x23   : > { %p3212_p8 = pnand %p3210_p7, %p3198_p0  ;;  %p3219_p5 = por %p3218_p6, %p3217_p9 }
  0x25   : > { %p3213_p11 = pneg %p3212_p8 }
  0x27   : > { %p3220_p10 = pnand %p3219_p5, %p3213_p11 }
  0x29   : > { %3223 = shalt.err (!%p3220_p10)
}
  0x2a   : > { %3009 = dma.hbm_to_vmem [thread:$0]  (!%p3450_p12), %s4181_s2, 128, %s235_s15, [#allocation4]  }
  0x2b   : > { %p4194_p13 = scmp.ne.s32.totalorder %s4192_s13, 0 }
  0x2c   : > { %p4195_p1 = scmp.eq.s32.totalorder (!%p4194_p13), %s3414_s28, 0 }
  0x2d   : > { %273 = sbr.rel (%p4194_p13) target bundleno = 1548 (0x60c), region = 44 }
  0x34   : > { %3297 = dma.done.wait (%p4195_p1), [#allocation4], 128   ;;  %p4196_p0 = pmov %p4195_p1 }
  0x35   : > { %v344_v0 = vlaneseq  ;;  %v3325_v1 = vmov 0.0   ;;  %s2721_s13 = sshll.u32 %s3414_s28, 1  ;;  %v2729_v7 = vld [vmem:[%s4180_s1 + $0x8] sm:$0xf]  ;;  %v2728_v8 = vld [vmem:[%s4180_s1 + $0x4] sm:$0xf] }
  0x36   : > { %3299 = vsyncadd (%p4196_p0), [#allocation4], 4294967168  ;;  %332 = vst [vmem:[#allocation2] sm:$0xf] %v3325_v1  ;;  %1075 = vmatprep.mubr.f32.mxu0 %v3325_v1  ;;  %1146 = vmatprep.mubr.f32.mxu1 %v3325_v1  ;;  %p318_p5 = scmp.lt.s32.totalorder %s2721_s13, 3  ;;  %s3326_s29 = smov 113  }
  0x37   : > { %333 = vst [vmem:[#allocation2 + $0x14] sm:$0xf] %v3325_v1  ;;  %v345_v2 = vshrl.u32 %v344_v0, 7  ;;  %v2730_v13 = vld [vmem:[%s4180_s1 + $0xc] sm:$0xf]  ;;  %s3327_s8 = smov 112  }
  0x38   : > { %s4204_s13 = smov (!%p318_p5, %s2721_s13), 3  ;;  %v2732_v28 = vld [vmem:[%s4180_s1 + $0x14] sm:$0xf]  ;;  %v2734_v35 = vld [vmem:[%s4180_s1 + $0x1c] sm:$0xf]  ;;  %s3328_s19 = smov 127  }
  0x39   : > { %v3481_v3 = vsub.s32 0, %v345_v2  ;;  %v3483_v4 = vsub.s32 1, %v345_v2  ;;  %v3485_v5 = vsub.s32 2, %v345_v2  ;;  %v3487_v6 = vsub.s32 3, %v345_v2  ;;  %s2770_s20 = sshll.u32 %s4204_s13, 3  ;;  %s3329_s22 = smov 1  }
  0x3a   : > { %s322_s23 = scalar_lea.vmem %s4179_s0, %s2770_s20  ;;  %v2733_v40 = vld [vmem:[%s4180_s1 + $0x18] sm:$0xf]  ;;  %v2731_v43 = vld [vmem:[%s4180_s1 + $0x10] sm:$0xf]  ;;  %v2735_v50 = vld [vmem:[%s4180_s1 + $0x20] sm:$0xf] }
  0x3b   : > { %v422_v9 = vrot.slane %v2729_v7, %v3481_v3  ;;  %v426_v10 = vrot.slane %v2729_v7, %v3483_v4  ;;  %v385_v11 = vrot.slane %v2728_v8, %v3481_v3  ;;  %v389_v12 = vrot.slane %v2728_v8, %v3483_v4  ;;  %v3514_v23 = vld [vmem:[%s322_s23] sm:$0xff]  ;;  %v3516_v24 = vld [vmem:[%s322_s23 + $0x8] sm:$0xff]  ;;  %s3330_s15 = smov 16   ;;  %s3331_s16 = smov 15  }
  0x3c   : > { %v430_v14 = vrot.slane %v2729_v7, %v3485_v5  ;;  %v434_v15 = vrot.slane %v2729_v7, %v3487_v6  ;;  %v393_v16 = vrot.slane %v2728_v8, %v3485_v5  ;;  %v397_v17 = vrot.slane %v2728_v8, %v3487_v6  ;;  %335 = vst [vmem:[#allocation2 + $0x4] sm:$0xff] %v3514_v23  ;;  %v342_v57 = vld [vmem:[%s4180_s1] sm:$0xf]  ;;  %s3332_s17 = smov 17   ;;  %s3333_s18 = smov 111  }
  0x3d   : > { %v435_v18 = vcombine.low %v422_v9, %v426_v10  ;;  %v398_v19 = vcombine.low %v385_v11, %v389_v12  ;;  %v467_v21 = vrot.slane %v2730_v13, %v3485_v5  ;;  %v471_v22 = vrot.slane %v2730_v13, %v3487_v6  ;;  %338 = vst [vmem:[#allocation2 + $0xc] sm:$0xff] %v3516_v24  ;;  %s3334_s20 = smov 126   ;;  %s3335_s21 = smov 110  }
  0x3e   : > { %v436_v20 = vcombine.low %v430_v14, %v434_v15  ;;  %v399_v25 = vcombine.low %v393_v16, %v397_v17  ;;  %v459_v26 = vrot.slane %v2730_v13, %v3481_v3  ;;  %v463_v27 = vrot.slane %v2730_v13, %v3483_v4  ;;  %s3337_s23 = smov 95   ;;  %s3342_s14 = smov 64  }
  0x3f   : > { %437 = vrot.lane.b32.xlu1 %v435_v18, %s3326_s29  ;;  %400 = vrot.lane.b32.xlu0 %v398_v19, %s3327_s8  ;;  %v473_v29 = vcombine.low %v467_v21, %v471_v22  ;;  %v534_v30 = vrot.slane %v2732_v28, %v3485_v5  ;;  %v538_v31 = vrot.slane %v2732_v28, %v3487_v6  ;;  %vm443_vm0 = vcmask 924672   ;;  %p4197_p9 = scmp.ne.s32.totalorder %s4190_s11, 0 }
  0x40   : > { %v472_v32 = vcombine.low %v459_v26, %v463_v27  ;;  %v526_v33 = vrot.slane %v2732_v28, %v3481_v3  ;;  %v530_v34 = vrot.slane %v2732_v28, %v3483_v4  ;;  %v608_v36 = vrot.slane %v2734_v35, %v3485_v5 }
  0x41   : > { %v612_v37 = vrot.slane %v2734_v35, %v3487_v6  ;;  %v600_v38 = vrot.slane %v2734_v35, %v3481_v3  ;;  %v604_v39 = vrot.slane %v2734_v35, %v3483_v4  ;;  %v540_v41 = vcombine.low %v534_v30, %v538_v31 }
  0x42   : > { %v539_v42 = vcombine.low %v526_v33, %v530_v34  ;;  %v571_v44 = vrot.slane %v2733_v40, %v3485_v5  ;;  %v575_v47 = vrot.slane %v2733_v40, %v3487_v6  ;;  %v563_v48 = vrot.slane %v2733_v40, %v3481_v3 }
  0x43   : > { %439 = vrot.lane.b32.xlu1 %v436_v20, %s3326_s29  ;;  %402 = vrot.lane.b32.xlu0 %v399_v25, %s3327_s8  ;;  %v614_v45 = vcombine.low %v608_v36, %v612_v37  ;;  %v613_v46 = vcombine.low %v600_v38, %v604_v39  ;;  %v567_v49 = vrot.slane %v2733_v40, %v3483_v4  ;;  %v3581_v16 = vld [vmem:[#allocation2] sm:$0xff]  ;;  %vm370_vm1 = vcmask 1043456   ;;  %s3338_s29 = smov 94  }
  0x44   : > { %v498_v51 = vrot.slane %v2731_v43, %v3481_v3  ;;  %v502_v52 = vrot.slane %v2731_v43, %v3483_v4  ;;  %v637_v53 = vrot.slane %v2735_v50, %v3481_v3  ;;  %v641_v54 = vrot.slane %v2735_v50, %v3483_v4  ;;  %v3591_v22 = vld [vmem:[#allocation2 + $0x8] sm:$0xff] }
  0x45   : > { %v645_v55 = vrot.slane %v2735_v50, %v3485_v5  ;;  %v649_v56 = vrot.slane %v2735_v50, %v3487_v6  ;;  %v577_v58 = vcombine.low %v571_v44, %v575_v47  ;;  %v576_v59 = vcombine.low %v563_v48, %v567_v49 }
  0x46   : > { %v511_v60 = vcombine.low %v498_v51, %v502_v52  ;;  %v347_v61 = vrot.slane %v342_v57, %v3481_v3  ;;  %v351_v62 = vrot.slane %v342_v57, %v3483_v4  ;;  %v650_v63 = vcombine.low %v637_v53, %v641_v54 }
  0x47   : > { %476 = vrot.lane.b32.xlu1 %v473_v29, %s3328_s19  ;;  %474 = vrot.lane.b32.xlu0 %v472_v32, %s3328_s19  ;;  %v651_v0 = vcombine.low %v645_v55, %v649_v56  ;;  %v355_v2 = vrot.slane %v342_v57, %v3485_v5  ;;  %v359_v7 = vrot.slane %v342_v57, %v3487_v6  ;;  %vm547_vm2 = vcmask 7168  }
  0x48   : > { %v515_v8 = vmul.f32 %v511_v60, %v3514_v23  ;;  %v506_v9 = vrot.slane %v2731_v43, %v3485_v5  ;;  %v510_v10 = vrot.slane %v2731_v43, %v3487_v6  ;;  %v360_v11 = vcombine.low %v347_v61, %v351_v62 }
  0x49   : > { %v361_v4 = vcombine.low %v355_v2, %v359_v7  ;;  %vm406_vm3 = vcmask 916480   ;;  %vm621_vm4 = vcmask 130048   ;;  %vm480_vm5 = vcmask 1039360  }
  0x4a   : > { %v751_v3 = vcombine.high %v515_v8, %v515_v8  ;;  %v512_v12 = vcombine.low %v506_v9, %v510_v10  ;;  %vm584_vm6 = vcmask 121856   ;;  %vm658_vm7 = vcmask 138240  }
  0x4b   : > { %543 = vrot.lane.b32.xlu1 %v540_v41, %s3329_s22  ;;  %541 = vrot.lane.b32.xlu0 %v539_v42, %s3329_s22  ;;  %s3336_s22 = smov 96   ;;  %vm368_vm8 = vcmask 908288   ;;  %vm714_vm9 = vcmask 1031168   ;;  %vm785_vm10 = vcmask 900096   ;;  %vm836_vm11 = vcmask 777216  }
  0x4c   : > { %v3079_v13 = vpack.i.bf16 %v751_v3, %v515_v8  ;;  %v3576_v14 = vmul.f32 %v3516_v24, %v512_v12  ;;  %vm810_vm12 = vcmask 785408   ;;  %vm861_vm13 = vcmask 769024  }
  0x4d   : > { %vm999_vm14 = vcmask 293888   ;;  %vm3341_vm15 = vmmov 0  }
  0x4f   : > { %617 = vrot.lane.b32.xlu1 %v614_v45, %s3330_s15  ;;  %615 = vrot.lane.b32.xlu0 %v613_v46, %s3330_s15 }
  0x53   : > { %580 = vrot.lane.b32.xlu1 %v577_v58, %s3331_s16  ;;  %578 = vrot.lane.b32.xlu0 %v576_v59, %s3331_s16  ;;  %s3345_s16 = smov 8  }
  0x57   : > { %652 = vrot.lane.b32.xlu0 %v650_v63, %s3332_s17  ;;  %654 = vrot.lane.b32.xlu1 %v651_v0, %s3332_s17 }
  0x5b   : > { %362 = vrot.lane.b32.xlu0 %v360_v11, %s3333_s18  ;;  %364 = vrot.lane.b32.xlu1 %v361_v4, %s3333_s18 }
  0x5f   : > { %3080 = vrot.lane.b32.xlu0 %v3079_v13, %s3333_s18  ;;  %757 = vrot.lane.b32.xlu1 %v3576_v14, %s3333_s18 }
  0xb1   : > { %v438_v5 = vpop.permute.xlu1 %437  ;;  %v401_v6 = vpop.permute.xlu0 %400 }
  0xb2   : > { %v441_v15 = vrot.slane %v438_v5, 4  ;;  %v404_v37 = vrot.slane %v401_v6, 4 }
  0xb4   : > { %v444_v17 = vsel %vm443_vm0, %v441_v15, %v438_v5  ;;  %v407_v46 = vsel %vm406_vm3, %v404_v37, %v401_v6 }
  0xb5   : > { %v3583_v18 = vpop.permute.xlu1 %439  ;;  %v3585_v19 = vpop.permute.xlu0 %402  ;;  %v3588_v20 = vmul.f32 %v444_v17, %v3581_v16  ;;  %v413_v55 = vmul.f32 %v407_v46, %v3581_v16 }
  0xb6   : > { %v442_v21 = vrot.slane %v3583_v18, 4  ;;  %v405_v35 = vrot.slane %v3585_v19, 4 }
  0xb7   : > { %v702_v30 = vcombine.high %v3588_v20, %v3588_v20  ;;  %v677_v8 = vcombine.low %v413_v55, %v413_v55 }
  0xb8   : > { %v445_v25 = vsel %vm370_vm1, %v441_v15, %v442_v21  ;;  %v408_v44 = vsel %vm370_vm1, %v404_v37, %v405_v35 }
  0xb9   : > { %v446_v26 = vsel %vm443_vm0, %v445_v25, %v3583_v18  ;;  %v3597_v27 = vpop.permute.xlu1 %476  ;;  %v475_v28 = vpop.permute.xlu0 %474  ;;  %v409_v53 = vsel %vm406_vm3, %v408_v44, %v3585_v19  ;;  %v752_v19 = vcombine.high %v3576_v14, %v3576_v14  ;;  %vm1845_vm0 = vcmask 64512  }
  0xba   : > { %v3600_v29 = vmul.f32 %v446_v26, %v3591_v22  ;;  %v478_v42 = vrot.slane %v475_v28, 4  ;;  %v479_v45 = vrot.slane %v3597_v27, 4  ;;  %v414_v62 = vmul.f32 %v409_v53, %v3591_v22 }
  0xbc   : > { %v3089_v31 = vpack.i.bf16 %v3600_v29, %v702_v30  ;;  %v481_v54 = vsel %vm480_vm5, %v478_v42, %v475_v28  ;;  %v482_v56 = vsel %vm370_vm1, %v478_v42, %v479_v45  ;;  %v3084_v3 = vpack.i.bf16 %v677_v8, %v414_v62 }
  0xbd   : > { %v3605_v32 = vpop.permute.xlu1 %543  ;;  %v3607_v33 = vpop.permute.xlu0 %541  ;;  %v487_v63 = vmul.f32 %v481_v54, %v3581_v16  ;;  %v483_v7 = vsel %vm480_vm5, %v482_v56, %v3597_v27  ;;  %v678_v15 = vcombine.low %v414_v62, %v414_v62  ;;  %v703_v25 = vcombine.high %v3600_v29, %v3600_v29 }
  0xbe   : > { %v545_v34 = vrot.slane %v3607_v33, 4  ;;  %3090 = vrot.lane.b32.xlu0 %v3089_v31, %s3334_s20  ;;  %v488_v4 = vmul.f32 %v483_v7, %v3591_v22  ;;  %v546_v5 = vrot.slane %v3605_v32, 4 }
  0xbf   : > { %v727_v12 = vcombine.low %v487_v63, %v487_v63  ;;  %v3119_v29 = vpack.i.bf16 %v3588_v20, %v703_v25 }
  0xc0   : > { %v548_v36 = vsel %vm547_vm2, %v545_v34, %v3607_v33  ;;  %v549_v28 = vsel %vm370_vm1, %v545_v34, %v546_v5  ;;  %v728_v37 = vcombine.low %v488_v4, %v488_v4 }
  0xc1   : > { %v554_v38 = vmul.f32 %v548_v36, %v3514_v23  ;;  %v3617_v39 = vpop.permute.xlu1 %617  ;;  %v3619_v40 = vpop.permute.xlu0 %615  ;;  %v3094_v17 = vpack.i.bf16 %v727_v12, %v488_v4  ;;  %v3114_v36 = vpack.i.bf16 %v678_v15, %v413_v55 }
  0xc2   : > { %v619_v41 = vrot.slane %v3619_v40, 4  ;;  %v620_v30 = vrot.slane %v3617_v39, 4  ;;  %v3124_v34 = vpack.i.bf16 %v728_v37, %v487_v63 }
  0xc3   : > { %v772_v43 = vcombine.low %v554_v38, %v554_v38 }
  0xc4   : > { %v622_v50 = vsel %vm621_vm4, %v619_v41, %v3619_v40  ;;  %v623_v33 = vsel %vm370_vm1, %v619_v41, %v620_v30 }
  0xc5   : > { %v3627_v47 = vpop.permute.xlu1 %580  ;;  %v579_v48 = vpop.permute.xlu0 %578  ;;  %v3099_v49 = vpack.i.bf16 %v554_v38, %v772_v43  ;;  %v628_v59 = vmul.f32 %v622_v50, %v3514_v23  ;;  %v550_v43 = vsel %vm547_vm2, %v549_v28, %v3605_v32  ;;  %v624_v20 = vsel %vm621_vm4, %v623_v33, %v3617_v39 }
  0xc6   : > { %v583_v51 = vrot.slane %v3627_v47, 4  ;;  %v582_v52 = vrot.slane %v579_v48, 4  ;;  %v555_v46 = vmul.f32 %v3516_v24, %v550_v43  ;;  %v629_v41 = vmul.f32 %v3516_v24, %v624_v20 }
  0xc7   : > { %3100 = vrot.lane.b32.xlu0 %v3099_v49, %s3335_s21  ;;  %v823_v11 = vcombine.low %v628_v59, %v628_v59 }
  0xc8   : > { %v585_v57 = vsel %vm584_vm6, %v582_v52, %v579_v48  ;;  %v586_v58 = vsel %vm370_vm1, %v582_v52, %v583_v51  ;;  %v773_v40 = vcombine.low %v555_v46, %v555_v46  ;;  %v3690_v48 = vld [vmem:[#allocation2 + $0x10] sm:$0xf]  ;;  %v824_v50 = vcombine.low %v629_v41, %v629_v41  ;;  %v519_v52 = vld [vmem:[#allocation2 + $0x14] sm:$0xf] }
  0xc9   : > { %v591_v60 = vmul.f32 %v585_v57, %v3514_v23  ;;  %v587_v61 = vsel %vm584_vm6, %v586_v58, %v3627_v47  ;;  %v653_v9 = vpop.permute.xlu0 %652  ;;  %v3109_v6 = vpack.i.bf16 %v628_v59, %v823_v11  ;;  %v655_v31 = vpop.permute.xlu1 %654  ;;  %v415_v39 = vmul.f32 %v405_v35, %v3690_v48 }
  0xca   : > { %v3653_v0 = vmul.f32 %v3516_v24, %v587_v61  ;;  %v656_v13 = vrot.slane %v653_v9, 4  ;;  %v657_v42 = vrot.slane %v655_v31, 4  ;;  %v452_v53 = vmul.f32 %v442_v21, %v3690_v48 }
  0xcb   : > { %v798_v2 = vcombine.high %v591_v60, %v591_v60  ;;  %v556_v54 = vmul.f32 %v546_v5, %v519_v52  ;;  %v679_v55 = vcombine.low %v415_v39, %v415_v39  ;;  %v630_v56 = vmul.f32 %v620_v30, %v519_v52 }
  0xcc   : > { %804 = vrot.lane.b32.xlu1 %v3653_v0, %s3336_s22  ;;  %v659_v26 = vsel %vm658_vm7, %v656_v13, %v653_v9  ;;  %v799_v35 = vcombine.high %v3653_v0, %v3653_v0  ;;  %v593_v21 = vmul.f32 %v583_v51, %v519_v52 }
  0xcd   : > { %v3104_v10 = vpack.i.bf16 %v798_v2, %v591_v60  ;;  %v665_v38 = vmul.f32 %v659_v26, %v3514_v23  ;;  %v660_v23 = vsel %vm370_vm1, %v656_v13, %v657_v42  ;;  %v774_v18 = vcombine.low %v556_v54, %v556_v54  ;;  %v363_v47 = vpop.permute.xlu0 %362  ;;  %v3722_v61 = vpop.permute.xlu1 %364 }
  0xce   : > { %v661_v32 = vsel %vm658_vm7, %v660_v23, %v655_v31  ;;  %v3134_v27 = vpack.i.bf16 %v593_v21, %v799_v35  ;;  %v825_v58 = vcombine.low %v630_v56, %v630_v56  ;;  %v667_v60 = vmul.f32 %v657_v42, %v519_v52 }
  0xcf   : > { %3105 = vrot.lane.b32.xlu0 %v3104_v10, %s3336_s22  ;;  %v849_v44 = vcombine.high %v665_v38, %v665_v38  ;;  %v666_v49 = vmul.f32 %v3516_v24, %v661_v32  ;;  %v489_v24 = vmul.f32 %v479_v45, %v3690_v48  ;;  %v3129_v45 = vpack.i.bf16 %v774_v18, %v555_v46 }
  0xd0   : > { %3085 = vrot.lane.b32.xlu1 %v3084_v3, %s3328_s19  ;;  %v3139_v59 = vpack.i.bf16 %v825_v58, %v629_v41  ;;  %v366_v7 = vrot.slane %v363_v47, 4  ;;  %v367_v8 = vrot.slane %v3722_v61, 4 }
  0xd1   : > { %v729_v57 = vcombine.low %v489_v24, %v489_v24  ;;  %v850_v14 = vcombine.high %v666_v49, %v666_v49  ;;  %v3720_v51 = vpop.permute.xlu0 %3080  ;;  %v3724_v63 = vpop.permute.xlu1 %757 }
  0xd2   : > { %v369_v11 = vsel %vm368_vm8, %v366_v7, %v363_v47  ;;  %v371_v3 = vsel %vm370_vm1, %v366_v7, %v367_v8  ;;  %v3082_v30 = vunpack.i.l.bf16 %v3720_v51 }
  0xd3   : > { %3110 = vrot.lane.b32.xlu0 %v3109_v6, %s3337_s23  ;;  %v376_v13 = vmul.f32 %v369_v11, %v3581_v16  ;;  %v372_v15 = vsel %vm368_vm8, %v371_v3, %v3722_v61 }
  0xd4   : > { %3095 = vrot.lane.b32.xlu1 %v3094_v17, %s3327_s8  ;;  %v3083_v17 = vunpack.i.h.bf16 %v3720_v51  ;;  %v3755_v42 = vmul.f32 %v372_v15, %v3591_v22 }
  0xd7   : > { %3115 = vrot.lane.b32.xlu0 %v3114_v36, %s3328_s19 }
  0xd8   : > { %3120 = vrot.lane.b32.xlu1 %v3119_v29, %s3334_s20 }
  0xdb   : > { %3125 = vrot.lane.b32.xlu0 %v3124_v34, %s3327_s8 }
  0xdc   : > { %853 = vrot.lane.b32.xlu1 %v849_v44, %s3338_s29 }
  0xdf   : > { %851 = vrot.lane.b32.xlu0 %v665_v38, %s3338_s29  ;;  %v670_v38 = vcombine.high %v376_v13, %v376_v13 }
  0xe0   : > { %779 = vrot.lane.b32.xlu1 %v773_v40, %s3335_s21 }
  0xe3   : > { %855 = vrot.lane.b32.xlu0 %v666_v49, %s3338_s29 }
  0xe4   : > { %830 = vrot.lane.b32.xlu1 %v824_v50, %s3337_s23 }
  0xe7   : > { %712 = vrot.lane.b32.xlu0 %v452_v53, %s3334_s20 }
  0xe8   : > { %688 = vrot.lane.b32.xlu1 %v679_v55, %s3328_s19  ;;  %s2771_s19 = sshll.u32 %s4204_s13, 4  ;;  %s3348_s13 = smov 40  }
  0xe9   : > { %s329_s20 = scalar_lea.vmem %s4183_s4, %s2771_s19 }
  0xeb   : > { %759 = vrot.lane.b32.xlu0 %v752_v19, %s3333_s18  ;;  %s3346_s18 = smov 48  }
  0xec   : > { %738 = vrot.lane.b32.xlu1 %v729_v57, %s3327_s8 }
  0xef   : > { %3135 = vrot.lane.b32.xlu0 %v3134_v27, %s3336_s22 }
  0xf0   : > { %3130 = vrot.lane.b32.xlu1 %v3129_v45, %s3335_s21 }
  0xf3   : > { %857 = vrot.lane.b32.xlu0 %v850_v14, %s3338_s29  ;;  %v761_v14 = vsel %vm368_vm8, %v3082_v30, %v3083_v17 }
  0xf4   : > { %3140 = vrot.lane.b32.xlu1 %v3139_v59, %s3337_s23  ;;  %s2773_s23 = sshll.u32 %s3414_s28, 9 }
  0xf8   : > { %859 = vrot.lane.b32.xlu1 %v667_v60, %s3338_s29  ;;  %s3921_s29 = sand.u32 1, %s3314_s25  }
  0xf9   : > { %s2719_s19 = sshll.u32 %s3921_s29, 5 }
  0xfa   : > { %s3924_s9 = scalar_lea.vmem [#allocation6], %s2719_s19 }
  0xfb   : > { %s2582_s21 = sshll.u32 %s3924_s9, 4  ;;  %s4079_s21 = int_to_ptr.vmem [resolvable:$true] %s2582_s21 }
 0x130   : > { %v3091_v62 = vpop.permute.xlu0 %3090 }
 0x131   : > { %v3093_v5 = vunpack.i.h.bf16 %v3091_v62  ;;  %v3092_v6 = vunpack.i.l.bf16 %v3091_v62  ;;  %v762_v62 = vsel %vm368_vm8, %v3083_v17, %v3724_v63 }
 0x133   : > { %v716_v29 = vsel %vm714_vm9, %v3092_v6, %v3093_v5 }
 0x139   : > { %v3726_v0 = vpop.permute.xlu0 %3100 }
 0x13a   : > { %v3103_v25 = vunpack.i.h.bf16 %v3726_v0  ;;  %v3102_v26 = vunpack.i.l.bf16 %v3726_v0 }
 0x13c   : > { %v786_v22 = vsel %vm785_vm10, %v3102_v26, %v3103_v25 }
 0x13e   : > { %v3728_v2 = vpop.permute.xlu1 %804 }
 0x141   : > { %v3731_v9 = vpop.permute.xlu0 %3105 }
 0x142   : > { %v3733_v10 = vpop.permute.xlu1 %3085  ;;  %v3108_v7 = vunpack.i.h.bf16 %v3731_v9  ;;  %v3107_v11 = vunpack.i.l.bf16 %v3731_v9 }
 0x143   : > { %v3087_v31 = vunpack.i.l.bf16 %v3733_v10  ;;  %v3088_v33 = vunpack.i.h.bf16 %v3733_v10 }
 0x144   : > { %v812_v9 = vsel %vm810_vm12, %v3108_v7, %v3728_v2 }
 0x145   : > { %v3739_v4 = vpop.permute.xlu0 %3110 }
 0x146   : > { %v3741_v12 = vpop.permute.xlu1 %3095  ;;  %v3113_v53 = vunpack.i.h.bf16 %v3739_v4  ;;  %v3112_v54 = vunpack.i.l.bf16 %v3739_v4 }
 0x147   : > { %v3098_v23 = vunpack.i.h.bf16 %v3741_v12  ;;  %v3097_v20 = vunpack.i.l.bf16 %v3741_v12 }
 0x148   : > { %v837_v15 = vsel %vm836_vm11, %v3112_v54, %v3113_v53 }
 0x149   : > { %v3116_v28 = vpop.permute.xlu0 %3115 }
 0x14a   : > { %v3118_v36 = vunpack.i.h.bf16 %v3116_v28  ;;  %v3117_v16 = vunpack.i.l.bf16 %v3116_v28  ;;  %v3751_v37 = vpop.permute.xlu1 %3120  ;;  %v811_v28 = vsel %vm810_vm12, %v3107_v11, %v3108_v7  ;;  %v1158_v7 = vld [vmem:[%s329_s20 + $0x8] sm:$0xff] }
 0x14b   : > { %v3123_v43 = vunpack.i.h.bf16 %v3751_v37  ;;  %v3122_v46 = vunpack.i.l.bf16 %v3751_v37 }
 0x14c   : > { %v691_v34 = vsel %vm480_vm5, %v3117_v16, %v3118_v36  ;;  %v692_v44 = vsel %vm480_vm5, %v3118_v36, %v3087_v31  ;;  %v690_v41 = vsel %vm480_vm5, %v3088_v33, %v3117_v16  ;;  %v881_v36 = vsel %vm370_vm1, %v3107_v11, %v3112_v54  ;;  %v1157_v11 = vld [vmem:[%s329_s20] sm:$0xff] }
 0x14d   : > { %v3126_v32 = vpop.permute.xlu0 %3125  ;;  %v867_v40 = vsel %vm370_vm1, %v670_v38, %v691_v34  ;;  %v868_v52 = vsel %vm370_vm1, %v3755_v42, %v692_v44  ;;  %v715_v55 = vsel %vm714_vm9, %v3123_v43, %v3092_v6  ;;  %v717_v19 = vsel %vm714_vm9, %v3093_v5, %v3122_v46 }
 0x14e   : > { %v3128_v49 = vunpack.i.h.bf16 %v3126_v32  ;;  %v3127_v50 = vunpack.i.l.bf16 %v3126_v32  ;;  %v854_v39 = vpop.permute.xlu1 %853  ;;  %v3149_v24 = vpack.i.bf16 %v868_v52, %v867_v40  ;;  %v866_v45 = vsel %vm370_vm1, %v376_v13, %v690_v41 }
 0x14f   : > { %v877_v13 = vsel %vm370_vm1, %v761_v14, %v786_v22  ;;  %v882_v38 = vsel %vm370_vm1, %v811_v28, %v837_v15  ;;  %v876_v33 = vsel %vm370_vm1, %v3082_v30, %v3102_v26  ;;  %v671_v44 = vcombine.high %v3755_v42, %v3755_v42 }
 0x150   : > { %v740_v35 = vsel %vm406_vm3, %v3098_v23, %v3127_v50  ;;  %v741_v56 = vsel %vm406_vm3, %v3127_v50, %v3128_v49  ;;  %v742_v57 = vsel %vm406_vm3, %v3128_v49, %v3097_v20  ;;  %v3164_v32 = vpack.i.bf16 %v881_v36, %v876_v33 }
 0x151   : > { %v852_v18 = vpop.permute.xlu0 %851  ;;  %v872_v21 = vsel %vm370_vm1, %v716_v29, %v741_v56  ;;  %v873_v27 = vsel %vm370_vm1, %v717_v19, %v742_v57  ;;  %v871_v58 = vsel %vm370_vm1, %v715_v55, %v740_v35  ;;  %v378_v29 = vmul.f32 %v367_v8, %v3690_v48 }
 0x152   : > { %v780_v59 = vpop.permute.xlu1 %779  ;;  %v3154_v60 = vpack.i.bf16 %v873_v27, %v872_v21  ;;  %v3144_v47 = vpack.i.bf16 %v871_v58, %v866_v45  ;;  %v862_v30 = vsel %vm861_vm13, %v852_v18, %v854_v39 }
 0x153   : > { %v787_v3 = vsel %vm785_vm10, %v3103_v25, %v780_v59 }
 0x154   : > { %v878_v4 = vsel %vm370_vm1, %v762_v62, %v787_v3  ;;  %3155 = vrot.lane.b32.xlu1 %v3154_v60, %s3332_s17  ;;  %3145 = vrot.lane.b32.xlu0 %v3144_v47, %s3332_s17  ;;  %v3339_v60 = vmov 0   ;;  %v887_v47 = vld [vmem:[%s4182_s3] sm:$0xff]  ;;  %v2750_v3 = vld [vmem:[%s329_s20 + $0x10] sm:$0xff] }
 0x155   : > { %v3800_v5 = vpop.permute.xlu0 %855  ;;  %v3159_v6 = vpack.i.bf16 %v878_v4, %v877_v13  ;;  %3194 = vset.pattern.permute.xlu1 %v3339_v60  ;;  %3195 = vset.pattern.permute.xlu0 %v3339_v60  ;;  %v2751_v4 = vld [vmem:[%s329_s20 + $0x18] sm:$0xff]  ;;  %s3347_s20 = smov 24  }
 0x156   : > { %v831_v17 = vpop.permute.xlu1 %830  ;;  %v863_v26 = vsel %vm861_vm13, %v854_v39, %v3800_v5 }
 0x157   : > { %v838_v25 = vsel %vm836_vm11, %v3113_v53, %v831_v17 }
 0x158   : > { %v883_v16 = vsel %vm370_vm1, %v812_v9, %v838_v25  ;;  %3160 = vrot.lane.b32.xlu1 %v3159_v6, %s3332_s17  ;;  %3150 = vrot.lane.b32.xlu0 %v3149_v24, %s3332_s17 }
 0x159   : > { %v713_v43 = vpop.permute.xlu0 %712  ;;  %v3169_v34 = vpack.i.bf16 %v883_v16, %v882_v38 }
 0x15a   : > { %v689_v23 = vpop.permute.xlu1 %688 }
 0x15b   : > { %v693_v22 = vsel %vm480_vm5, %v3087_v31, %v689_v23  ;;  %v870_v61 = vsel %vm370_vm1, %v378_v29, %v689_v23  ;;  %v718_v31 = vsel %vm714_vm9, %v3122_v46, %v713_v43 }
 0x15c   : > { %v869_v48 = vsel %vm370_vm1, %v671_v44, %v693_v22  ;;  %3165 = vrot.lane.b32.xlu1 %v3164_v32, %s3332_s17  ;;  %3170 = vrot.lane.b32.xlu0 %v3169_v34, %s3332_s17 }
 0x15d   : > { %v3174_v51 = vpack.i.bf16 %v870_v61, %v869_v48  ;;  %v760_v0 = vpop.permute.xlu0 %759 }
 0x15e   : > { %v739_v8 = vpop.permute.xlu1 %738  ;;  %v763_v12 = vsel %vm368_vm8, %v3724_v63, %v760_v0 }
 0x15f   : > { %v743_v10 = vsel %vm406_vm3, %v3097_v20, %v739_v8  ;;  %v875_v49 = vsel %vm370_vm1, %v713_v43, %v739_v8 }
 0x160   : > { %957 = vrot.lane.b32.xlu1 %v863_v26, %s3332_s17  ;;  %955 = vrot.lane.b32.xlu0 %v862_v30, %s3332_s17  ;;  %v874_v41 = vsel %vm370_vm1, %v718_v31, %v743_v10 }
 0x161   : > { %v3136_v42 = vpop.permute.xlu0 %3135  ;;  %v3179_v53 = vpack.i.bf16 %v875_v49, %v874_v41 }
 0x162   : > { %v3131_v40 = vpop.permute.xlu1 %3130  ;;  %v3138_v20 = vunpack.i.h.bf16 %v3136_v42  ;;  %v3137_v52 = vunpack.i.l.bf16 %v3136_v42 }
 0x163   : > { %v3133_v50 = vunpack.i.h.bf16 %v3131_v40  ;;  %v3132_v39 = vunpack.i.l.bf16 %v3131_v40 }
 0x164   : > { %3175 = vrot.lane.b32.xlu1 %v3174_v51, %s3332_s17  ;;  %953 = vrot.lane.b32.xlu0 %v852_v18, %s3332_s17  ;;  %v813_v56 = vsel %vm810_vm12, %v3728_v2, %v3137_v52  ;;  %v814_v57 = vsel %vm810_vm12, %v3137_v52, %v3138_v20  ;;  %v886_v52 = vld [vmem:[#allocation3] sm:$0xff] }
 0x165   : > { %v788_v37 = vsel %vm785_vm10, %v780_v59, %v3132_v39  ;;  %v789_v46 = vsel %vm785_vm10, %v3132_v39, %v3133_v50  ;;  %v858_v18 = vpop.permute.xlu0 %857 }
 0x166   : > { %v3141_v54 = vpop.permute.xlu1 %3140  ;;  %v879_v55 = vsel %vm370_vm1, %v763_v12, %v788_v37  ;;  %v880_v24 = vsel %vm370_vm1, %v760_v0, %v789_v46  ;;  %v864_v59 = vsel %vm861_vm13, %v3800_v5, %v858_v18 }
 0x167   : > { %v3143_v19 = vunpack.i.h.bf16 %v3141_v54  ;;  %v3142_v35 = vunpack.i.l.bf16 %v3141_v54  ;;  %v3184_v63 = vpack.i.bf16 %v880_v24, %v879_v55 }
 0x168   : > { %3180 = vrot.lane.b32.xlu0 %v3179_v53, %s3332_s17 }
 0x169   : > { %v839_v21 = vsel %vm836_vm11, %v831_v17, %v3142_v35  ;;  %v840_v27 = vsel %vm836_vm11, %v3142_v35, %v3143_v19  ;;  %3185 = vrot.lane.b32.xlu1 %v3184_v63, %s3332_s17 }
 0x16a   : > { %v884_v45 = vsel %vm370_vm1, %v813_v56, %v839_v21  ;;  %v885_v58 = vsel %vm370_vm1, %v814_v57, %v840_v27  ;;  %v860_v2 = vpop.permute.xlu1 %859 }
 0x16b   : > { %v3189_v14 = vpack.i.bf16 %v885_v58, %v884_v45  ;;  %v865_v62 = vsel %vm861_vm13, %v858_v18, %v860_v2 }
 0x16d   : > { %959 = vrot.lane.b32.xlu1 %v864_v59, %s3332_s17  ;;  %3190 = vrot.lane.b32.xlu0 %v3189_v14, %s3332_s17 }
 0x171   : > { %961 = vrot.lane.b32.xlu0 %v865_v62, %s3332_s17  ;;  %890 = vperm.xlu1 %3194, %v887_v47   ;;  %s3349_s17 = smov 56  }
 0x175   : > { %1168 = vperm.xlu1 %3194, %v1158_v7   ;;  %1161 = vperm.xlu0 %3195, %v1157_v11  }
 0x179   : > { %1863 = vperm.xlu1 %3194, %v2750_v3   ;;  %1870 = vperm.xlu0 %3195, %v2751_v4  }
 0x1c6   : > { %v3156_v13 = vpop.permute.xlu1 %3155  ;;  %v3146_v5 = vpop.permute.xlu0 %3145 }
 0x1c7   : > { %v3158_v6 = vunpack.i.h.bf16 %v3156_v13  ;;  %v3157_v15 = vunpack.i.l.bf16 %v3156_v13  ;;  %v3148_v17 = vunpack.i.h.bf16 %v3146_v5  ;;  %v3147_v25 = vunpack.i.l.bf16 %v3146_v5  ;;  %v1175_v5 = vld [vmem:[%s4184_s5] sm:$0xff] }
 0x1c9   : > { %v968_v38 = vsel %vm658_vm7, %v3157_v15, %v3158_v6  ;;  %v967_v29 = vsel %vm658_vm7, %v3148_v17, %v3157_v15  ;;  %v3340_v15 = vmov 0.0|0.0  }
 0x1ca   : > { %v3872_v28 = vpop.permute.xlu1 %3160  ;;  %v3151_v9 = vpop.permute.xlu0 %3150 }
 0x1cb   : > { %v3153_v36 = vunpack.i.h.bf16 %v3151_v9  ;;  %v3152_v16 = vunpack.i.l.bf16 %v3151_v9  ;;  %v3163_v43 = vunpack.i.h.bf16 %v3872_v28  ;;  %v3162_v33 = vunpack.i.l.bf16 %v3872_v28 }
 0x1cd   : > { %v964_v34 = vsel %vm658_vm7, %v3152_v16, %v3153_v36  ;;  %v963_v44 = vsel %vm658_vm7, %v3147_v25, %v3152_v16  ;;  %v972_v26 = vsel %vm658_vm7, %v3162_v33, %v3163_v43 }
 0x1ce   : > { %v3166_v23 = vpop.permute.xlu1 %3165  ;;  %v3171_v32 = vpop.permute.xlu0 %3170  ;;  %v2934_v22 = vpack.c.bf16 %v968_v38, %v964_v34  ;;  %v2936_v61 = vpack.c.bf16 %v967_v29, %v963_v44 }
 0x1cf   : > { %v3168_v48 = vunpack.i.h.bf16 %v3166_v23  ;;  %v3167_v51 = vunpack.i.l.bf16 %v3166_v23  ;;  %v3173_v0 = vunpack.i.h.bf16 %v3171_v32  ;;  %v3172_v8 = vunpack.i.l.bf16 %v3171_v32 }
 0x1d0   : > { %2935 = vmatprep.subr.bf16.mxu0 %v2934_v22 }
 0x1d1   : > { %2937 = vmatpush1.bf16.msra.mxu0 %v2936_v61  ;;  %v976_v30 = vsel %vm658_vm7, %v3172_v8, %v3173_v0  ;;  %v971_v10 = vsel %vm658_vm7, %v3167_v51, %v3162_v33  ;;  %v975_v31 = vsel %vm658_vm7, %v3168_v48, %v3172_v8 }
 0x1d2   : > { %v958_v42 = vpop.permute.xlu1 %957  ;;  %v956_v40 = vpop.permute.xlu0 %955  ;;  %v2938_v41 = vpack.c.bf16 %v976_v30, %v972_v26  ;;  %v2940_v49 = vpack.c.bf16 %v975_v31, %v971_v10 }
 0x1d3   : > { %v980_v50 = vsel %vm658_vm7, %v956_v40, %v958_v42 }
 0x1d4   : > { %2939 = vmatprep.subr.bf16.mxu0 %v2938_v41 }
 0x1d5   : > { %2941 = vmatpush1.bf16.msra.mxu0 %v2940_v49 }
 0x1d6   : > { %v3176_v39 = vpop.permute.xlu1 %3175  ;;  %v954_v12 = vpop.permute.xlu0 %953  ;;  %2736 = vmatprep.subr.msk.mxu0 %vm370_vm1, %v980_v50 }
 0x1d7   : > { %v979_v20 = vsel %vm658_vm7, %v954_v12, %v956_v40  ;;  %v3178_v37 = vunpack.i.h.bf16 %v3176_v39  ;;  %v3177_v46 = vunpack.i.l.bf16 %v3176_v39 }
 0x1d9   : > { %2737 = vmatpush1.msk.msra.mxu0 %vm370_vm1, %v979_v20  ;;  %v966_v19 = vsel %vm658_vm7, %v3177_v46, %v3178_v37  ;;  %v965_v63 = vsel %vm658_vm7, %v3153_v36, %v3177_v46 }
 0x1da   : > { %v3181_v53 = vpop.permute.xlu0 %3180  ;;  %2738 = vmatmul.mubr.msk.f32.vlgmr.msra.gmra.mrb[0].mxu0 %vm999_vm14, %v886_v52  ;;  %2950 = vmatprep.subr.bf16.mxu0 %v3340_v15 }
 0x1db   : > { %v3183_v54 = vunpack.i.h.bf16 %v3181_v53  ;;  %v3182_v55 = vunpack.i.l.bf16 %v3181_v53  ;;  %v3186_v24 = vpop.permute.xlu1 %3185  ;;  %2826 = vmatprep.mubr.msk.f32.mxu0 %vm3341_vm15, %v3325_v1 }
 0x1dc   : > { %v3188_v57 = vunpack.i.h.bf16 %v3186_v24  ;;  %v3187_v18 = vunpack.i.l.bf16 %v3186_v24 }
 0x1dd   : > { %v970_v35 = vsel %vm658_vm7, %v3182_v55, %v3183_v54  ;;  %v969_v56 = vsel %vm658_vm7, %v3158_v6, %v3182_v55  ;;  %v1176_v6 = vld [vmem:[%s4184_s5 + $0x8] sm:$0xff] }
 0x1de   : > { %v2942_v21 = vpack.c.bf16 %v970_v35, %v966_v19  ;;  %v2944_v27 = vpack.c.bf16 %v969_v56, %v965_v63  ;;  %v974_v59 = vsel %vm658_vm7, %v3187_v18, %v3188_v57  ;;  %v973_v2 = vsel %vm658_vm7, %v3163_v43, %v3187_v18 }
 0x1df   : > { %v3191_v45 = vpop.permute.xlu0 %3190  ;;  %v960_v3 = vpop.permute.xlu1 %959  ;;  %v3909_v17 = vpack.c.bf16 %v1176_v6, %v1175_v5 }
 0x1e0   : > { %v3193_v58 = vunpack.i.h.bf16 %v3191_v45  ;;  %v3192_v14 = vunpack.i.l.bf16 %v3191_v45  ;;  %2943 = vmatprep.subr.bf16.mxu1 %v2942_v21  ;;  %v981_v13 = vsel %vm658_vm7, %v958_v42, %v960_v3 }
 0x1e1   : > { %2945 = vmatpush1.bf16.msra.mxu1 %v2944_v27  ;;  %2952 = vmatpush3.bf16.msra.mxu0 %v3909_v17 }
 0x1e2   : > { %v978_v60 = vsel %vm658_vm7, %v3192_v14, %v3193_v58  ;;  %v977_v47 = vsel %vm658_vm7, %v3173_v0, %v3192_v14  ;;  %2956 = vmatprep.subr.bf16.mxu0 %v3340_v15 }
 0x1e3   : > { %v962_v62 = vpop.permute.xlu0 %961  ;;  %v2946_v7 = vpack.c.bf16 %v978_v60, %v974_v59  ;;  %v2948_v11 = vpack.c.bf16 %v977_v47, %v973_v2 }
 0x1e4   : > { %v982_v4 = vsel %vm658_vm7, %v960_v3, %v962_v62 }
 0x1e5   : > { %2947 = vmatprep.subr.bf16.mxu1 %v2946_v7 }
 0x1e6   : > { %2949 = vmatpush1.bf16.msra.mxu1 %v2948_v11 }
 0x1e7   : > { %2739 = vmatprep.subr.msk.mxu1 %vm370_vm1, %v982_v4 }
 0x1ea   : > { %2740 = vmatpush1.msk.msra.mxu1 %vm370_vm1, %v981_v13  ;;  %vm1848_vm1 = vcmask 195584  }
 0x1eb   : > { %2741 = vmatmul.mubr.msk.f32.vlgmr.msra.gmra.mrb[0].mxu1 %vm999_vm14, %v886_v52  ;;  %2953 = vmatprep.subr.bf16.mxu1 %v3340_v15 }
 0x1ec   : > { %2955 = vmatpush3.bf16.msra.mxu1 %v3909_v17  ;;  %2833 = vmatprep.mubr.msk.f32.mxu1 %vm3341_vm15, %v3325_v1 }
 0x1ed   : > { %2959 = vmatprep.subr.bf16.mxu1 %v3340_v15 }
 0x1f0   : > { %v891_v28 = vpop.permute.xlu1 %890 }
 0x1f4   : > { %v1162_v29 = vpop.permute.xlu0 %1161  ;;  %v1169_v34 = vpop.permute.xlu1 %1168 }
 0x1f8   : > { %v1864_v8 = vpop.permute.xlu1 %1863  ;;  %v1871_v10 = vpop.permute.xlu0 %1870 }
 0x2ad   : > { %v1077_v9 = vpop.f32.mrb[0].mxu0 }
 0x2ae   : > { %v1078_v25 = vadd.f32 %v1077_v9, %v891_v28  ;;  %v1079_v36 = vpop.f32.mrb[1].mxu0 }
 0x2af   : > { %v1080_v16 = vadd.f32 %v1079_v36, %v891_v28 }
 0x2b0   : > { %v1153_v38 = vmax.f32 %v1078_v25, 0.0 }
 0x2b1   : > { %v1154_v43 = vmax.f32 %v1080_v16, 0.0 }
 0x2b2   : > { %v1164_v33 = vmul.f32 %v1162_v29, %v1153_v38 }
 0x2b3   : > { %v1165_v44 = vmul.f32 %v1162_v29, %v1154_v43 }
 0x2b4   : > { %v1171_v23 = vadd.f32 %v1169_v34, %v1164_v33 }
 0x2b5   : > { %v1172_v32 = vadd.f32 %v1169_v34, %v1165_v44 }
 0x2b6   : > { %1173 = vst [vmem:[%s3924_s9] sm:$0xff] %v1171_v23  ;;  %1178 = vrot.lane.b32.xlu1 %v1171_v23, %s3327_s8 }
 0x2b7   : > { %1498 = vrot.lane.b32.xlu0 %v1172_v32, %s3327_s8  ;;  %1174 = vst [vmem:[%s3924_s9 + $0x8] sm:$0xff] %v1172_v32 }
 0x2be   : > { %v1148_v22 = vpop.f32.mrb[0].mxu1 }
 0x2bf   : > { %v1149_v61 = vadd.f32 %v1148_v22, %v891_v28  ;;  %v1150_v48 = vpop.f32.mrb[1].mxu1 }
 0x2c0   : > { %v1151_v51 = vadd.f32 %v1150_v48, %v891_v28 }
 0x2c1   : > { %v1155_v0 = vmax.f32 %v1149_v61, 0.0 }
 0x2c2   : > { %v1156_v26 = vmax.f32 %v1151_v51, 0.0 }
 0x2c3   : > { %v1866_v30 = vmul.f32 %v1864_v8, %v1155_v0 }
 0x2c4   : > { %v1867_v31 = vmul.f32 %v1864_v8, %v1156_v26 }
 0x2c5   : > { %v1873_v42 = vadd.f32 %v1871_v10, %v1866_v30 }
 0x2c6   : > { %v1874_v40 = vadd.f32 %v1871_v10, %v1867_v31 }
 0x2c7   : > { %2752 = vst [vmem:[%s3924_s9 + $0x10] sm:$0xff] %v1873_v42  ;;  %1881 = vrot.lane.b32.xlu1 %v1873_v42, %s3327_s8 }
 0x2c8   : > { %2753 = vst [vmem:[%s3924_s9 + $0x18] sm:$0xff] %v1874_v40  ;;  %2201 = vrot.lane.b32.xlu0 %v1874_v40, %s3327_s8  ;;  %s3343_s8 = smov 32   ;;  %s3350_s9 = smov [#allocation6]  }
 0x328   : > { %v1179_v41 = vpop.permute.xlu1 %1178 }
 0x329   : > { %v1181_v49 = vmax.f32 %v1171_v23, %v1179_v41  ;;  %v1499_v50 = vpop.permute.xlu0 %1498 }
 0x32a   : > { %v1501_v39 = vmax.f32 %v1172_v32, %v1499_v50 }
 0x32b   : > { %1339 = vrot.lane.b32.xlu0 %v1181_v49, %s3342_s14  ;;  %1260 = vrot.lane.b32.xlu1 %v1181_v49, %s3336_s22 }
 0x32c   : > { %2827 = vmatmul.mubr.msk.f32.vlgmr.msra.gmra.mrb[2].mxu0 %vm621_vm4, %v1181_v49 }
 0x32d   : > { %2958 = vmatpush3.bf16.msra.mxu0 %v3909_v17  ;;  %2840 = vmatprep.mubr.msk.f32.mxu0 %vm3341_vm15, %v3325_v1 }
 0x32e   : > { %2962 = vmatprep.subr.bf16.mxu0 %v3340_v15 }
 0x32f   : > { %1580 = vrot.lane.b32.xlu0 %v1501_v39, %s3336_s22  ;;  %1418 = vrot.lane.b32.xlu1 %v1181_v49, %s3343_s8 }
 0x333   : > { %1738 = vrot.lane.b32.xlu0 %v1501_v39, %s3343_s8  ;;  %1659 = vrot.lane.b32.xlu1 %v1501_v39, %s3342_s14 }
 0x339   : > { %v1882_v12 = vpop.permute.xlu1 %1881 }
 0x33a   : > { %v1884_v20 = vmax.f32 %v1873_v42, %v1882_v12  ;;  %v2202_v52 = vpop.permute.xlu0 %2201 }
 0x33b   : > { %v2204_v37 = vmax.f32 %v1874_v40, %v2202_v52 }
 0x33c   : > { %2042 = vrot.lane.b32.xlu0 %v1884_v20, %s3342_s14  ;;  %1963 = vrot.lane.b32.xlu1 %v1884_v20, %s3336_s22 }
 0x340   : > { %2283 = vrot.lane.b32.xlu0 %v2204_v37, %s3336_s22  ;;  %2121 = vrot.lane.b32.xlu1 %v1884_v20, %s3343_s8  ;;  %s3344_s22 = smov 120  }
 0x344   : > { %2441 = vrot.lane.b32.xlu0 %v2204_v37, %s3343_s8  ;;  %2362 = vrot.lane.b32.xlu1 %v2204_v37, %s3342_s14 }
 0x39d   : > { %v1340_v46 = vpop.permute.xlu0 %1339  ;;  %v1261_v53 = vpop.permute.xlu1 %1260 }
 0x39e   : > { %2834 = vmatmul.mubr.msk.f32.vlgmr.msra.gmra.mrb[2].mxu1 %vm621_vm4, %v1261_v53  ;;  %2841 = vmatmul.mubr.msk.f32.vlgmr.msra.gmra.mrb[4].mxu0 %vm621_vm4, %v1340_v46 }
 0x39f   : > { %2961 = vmatpush3.bf16.msra.mxu1 %v3909_v17  ;;  %2964 = vmatpush3.bf16.msra.mxu0 %v3909_v17 }
 0x3a0   : > { %2847 = vmatprep.mubr.msk.f32.mxu1 %vm3341_vm15, %v3325_v1  ;;  %2854 = vmatprep.mubr.msk.f32.mxu0 %vm3341_vm15, %v3325_v1 }
 0x3a1   : > { %v1419_v54 = vpop.permute.xlu1 %1418  ;;  %2965 = vmatprep.subr.bf16.mxu1 %v3340_v15  ;;  %2968 = vmatprep.subr.bf16.mxu0 %v3340_v15  ;;  %v1581_v55 = vpop.permute.xlu0 %1580 }
 0x3a2   : > { %2848 = vmatmul.mubr.msk.f32.vlgmr.msra.gmra.mrb[4].mxu1 %vm621_vm4, %v1419_v54  ;;  %2855 = vmatmul.mubr.msk.f32.vlgmr.msra.gmra.mrb[6].mxu0 %vm621_vm4, %v1501_v39 }
 0x3a3   : > { %2967 = vmatpush3.bf16.msra.mxu1 %v3909_v17  ;;  %2970 = vmatpush3.bf16.msra.mxu0 %v3909_v17 }
 0x3a4   : > { %2861 = vmatprep.mubr.msk.f32.mxu1 %vm3341_vm15, %v3325_v1  ;;  %2868 = vmatprep.mubr.msk.f32.mxu0 %vm3341_vm15, %v3325_v1 }
 0x3a5   : > { %v1660_v24 = vpop.permute.xlu1 %1659  ;;  %2971 = vmatprep.subr.bf16.mxu1 %v3340_v15  ;;  %2974 = vmatprep.subr.bf16.mxu0 %v3340_v15  ;;  %v1739_v19 = vpop.permute.xlu0 %1738 }
 0x3a6   : > { %2862 = vmatmul.mubr.msk.f32.vlgmr.msra.gmra.mrb[6].mxu1 %vm621_vm4, %v1581_v55  ;;  %2869 = vmatmul.mubr.msk.f32.vlgmr.msra.gmra.mrb[8].mxu0 %vm621_vm4, %v1660_v24 }
 0x3a7   : > { %2973 = vmatpush3.bf16.msra.mxu1 %v3909_v17  ;;  %2976 = vmatpush3.bf16.msra.mxu0 %v3909_v17 }
 0x3a8   : > { %2875 = vmatprep.mubr.msk.f32.mxu1 %vm3341_vm15, %v3325_v1  ;;  %2882 = vmatprep.mubr.msk.f32.mxu0 %vm3341_vm15, %v3325_v1 }
 0x3a9   : > { %2977 = vmatprep.subr.bf16.mxu1 %v3340_v15  ;;  %2980 = vmatprep.subr.bf16.mxu0 %v3340_v15 }
 0x3aa   : > { %2876 = vmatmul.mubr.msk.f32.vlgmr.msra.gmra.mrb[8].mxu1 %vm621_vm4, %v1739_v19  ;;  %2883 = vmatmul.mubr.msk.f32.vlgmr.msra.gmra.mrb[10].mxu0 %vm621_vm4, %v1884_v20 }
 0x3ab   : > { %2979 = vmatpush3.bf16.msra.mxu1 %v3909_v17  ;;  %2982 = vmatpush3.bf16.msra.mxu0 %v3909_v17 }
 0x3ac   : > { %2889 = vmatprep.mubr.msk.f32.mxu1 %vm3341_vm15, %v3325_v1  ;;  %2896 = vmatprep.mubr.msk.f32.mxu0 %vm3341_vm15, %v3325_v1 }
 0x3ad   : > { %2983 = vmatprep.subr.bf16.mxu1 %v3340_v15  ;;  %2986 = vmatprep.subr.bf16.mxu0 %v3340_v15 }
 0x3ae   : > { %v2043_v35 = vpop.permute.xlu0 %2042  ;;  %v1964_v63 = vpop.permute.xlu1 %1963 }
 0x3af   : > { %2890 = vmatmul.mubr.msk.f32.vlgmr.msra.gmra.mrb[10].mxu1 %vm621_vm4, %v1964_v63  ;;  %2897 = vmatmul.mubr.msk.f32.vlgmr.msra.gmra.mrb[12].mxu0 %vm621_vm4, %v2043_v35 }
 0x3b0   : > { %2985 = vmatpush3.bf16.msra.mxu1 %v3909_v17  ;;  %2988 = vmatpush3.bf16.msra.mxu0 %v3909_v17 }
 0x3b1   : > { %2903 = vmatprep.mubr.msk.f32.mxu1 %vm3341_vm15, %v3325_v1  ;;  %2910 = vmatprep.mubr.msk.f32.mxu0 %vm3341_vm15, %v3325_v1 }
 0x3b2   : > { %v2122_v56 = vpop.permute.xlu1 %2121  ;;  %2989 = vmatprep.subr.bf16.mxu1 %v3340_v15  ;;  %2992 = vmatprep.subr.bf16.mxu0 %v3340_v15  ;;  %v2284_v57 = vpop.permute.xlu0 %2283 }
 0x3b3   : > { %2904 = vmatmul.mubr.msk.f32.vlgmr.msra.gmra.mrb[12].mxu1 %vm621_vm4, %v2122_v56  ;;  %2911 = vmatmul.mubr.msk.f32.vlgmr.msra.gmra.mrb[14].mxu0 %vm621_vm4, %v2204_v37 }
 0x3b4   : > { %2991 = vmatpush3.bf16.msra.mxu1 %v3909_v17  ;;  %2994 = vmatpush3.bf16.msra.mxu0 %v3909_v17 }
 0x3b5   : > { %2917 = vmatprep.mubr.msk.f32.mxu1 %vm3341_vm15, %v3325_v1  ;;  %2924 = vmatprep.mubr.msk.f32.mxu0 %vm3341_vm15, %v3325_v1 }
 0x3b6   : > { %v2363_v18 = vpop.permute.xlu1 %2362  ;;  %2995 = vmatprep.subr.bf16.mxu1 %v3340_v15  ;;  %v2442_v21 = vpop.permute.xlu0 %2441 }
 0x3b7   : > { %2918 = vmatmul.mubr.msk.f32.vlgmr.msra.gmra.mrb[14].mxu1 %vm621_vm4, %v2284_v57  ;;  %2925 = vmatmul.mubr.msk.f32.vlgmr.msra.gmra.mrb[16].mxu0 %vm621_vm4, %v2363_v18 }
 0x3b8   : > { %2997 = vmatpush3.bf16.msra.mxu1 %v3909_v17  ;;  %2931 = vmatprep.mubr.msk.f32.mxu1 %vm3341_vm15, %v3325_v1 }
 0x3bb   : > { %2932 = vmatmul.mubr.msk.f32.vlgmr.msra.gmra.mrb[16].mxu1 %vm621_vm4, %v2442_v21 }
 0x3ff   : > { %v4016_v27 = vpop.f32.mrb[2].mxu0 }
 0x400   : > { %v2828_v45 = vpop.f32.mrb[3].mxu0 }
 0x471   : > { %v4018_v58 = vpop.f32.mrb[2].mxu1  ;;  %v4020_v14 = vpop.f32.mrb[4].mxu0 }
 0x472   : > { %v2835_v59 = vpop.f32.mrb[3].mxu1  ;;  %v2842_v60 = vpop.f32.mrb[5].mxu0 }
 0x475   : > { %v4022_v2 = vpop.f32.mrb[4].mxu1  ;;  %v4024_v47 = vpop.f32.mrb[6].mxu0 }
 0x476   : > { %v2849_v62 = vpop.f32.mrb[5].mxu1  ;;  %v2856_v7 = vpop.f32.mrb[7].mxu0 }
 0x479   : > { %v4026_v11 = vpop.f32.mrb[6].mxu1  ;;  %v4028_v1 = vpop.f32.mrb[8].mxu0 }
 0x47a   : > { %v2863_v3 = vpop.f32.mrb[7].mxu1  ;;  %v2870_v4 = vpop.f32.mrb[9].mxu0 }
 0x47d   : > { %v4030_v13 = vpop.f32.mrb[8].mxu1  ;;  %v4032_v5 = vpop.f32.mrb[10].mxu0 }
 0x47e   : > { %v2877_v6 = vpop.f32.mrb[9].mxu1  ;;  %v2884_v15 = vpop.f32.mrb[11].mxu0 }
 0x482   : > { %v2033_v17 = vpop.f32.mrb[10].mxu1  ;;  %v2112_v28 = vpop.f32.mrb[12].mxu0 }
 0x483   : > { %2117 = vrot.lane.b32.xlu0 %v2112_v28, %s3344_s22  ;;  %v2898_v9 = vpop.f32.mrb[13].mxu0  ;;  %2038 = vrot.lane.b32.xlu1 %v2033_v17, %s3344_s22  ;;  %v2891_v25 = vpop.f32.mrb[11].mxu1 }
 0x486   : > { %v2191_v36 = vpop.f32.mrb[12].mxu1  ;;  %v2274_v16 = vpop.f32.mrb[14].mxu0 }
 0x487   : > { %2279 = vrot.lane.b32.xlu0 %v2274_v16, %s3344_s22  ;;  %v2912_v38 = vpop.f32.mrb[15].mxu0  ;;  %2196 = vrot.lane.b32.xlu1 %v2191_v36, %s3344_s22  ;;  %v2905_v29 = vpop.f32.mrb[13].mxu1 }
 0x48a   : > { %v2353_v43 = vpop.f32.mrb[14].mxu1  ;;  %v2432_v33 = vpop.f32.mrb[16].mxu0 }
 0x48b   : > { %2358 = vrot.lane.b32.xlu1 %v2353_v43, %s3344_s22  ;;  %v2919_v34 = vpop.f32.mrb[15].mxu1  ;;  %2437 = vrot.lane.b32.xlu0 %v2432_v33, %s3344_s22  ;;  %v2926_v44 = vpop.f32.mrb[17].mxu0 }
 0x48e   : > { %v2511_v23 = vpop.f32.mrb[16].mxu1 }
 0x48f   : > { %2516 = vrot.lane.b32.xlu1 %v2511_v23, %s3344_s22  ;;  %v2933_v32 = vpop.f32.mrb[17].mxu1  ;;  %1335 = vrot.lane.b32.xlu0 %v4018_v58, %s3344_s22 }
 0x493   : > { %1959 = vrot.lane.b32.xlu1 %v4032_v5, %s3344_s22  ;;  %1414 = vrot.lane.b32.xlu0 %v4020_v14, %s3344_s22 }
 0x497   : > { %1493 = vrot.lane.b32.xlu1 %v4022_v2, %s3344_s22 }
 0x49b   : > { %1576 = vrot.lane.b32.xlu1 %v4024_v47, %s3344_s22 }
 0x49f   : > { %1655 = vrot.lane.b32.xlu1 %v4026_v11, %s3344_s22 }
 0x4a3   : > { %1734 = vrot.lane.b32.xlu1 %v4028_v1, %s3344_s22 }
 0x4a7   : > { %1813 = vrot.lane.b32.xlu1 %v4030_v13, %s3344_s22 }
 0x4f5   : > { %v2118_v22 = vpop.permute.xlu0 %2117  ;;  %v2039_v61 = vpop.permute.xlu1 %2038 }
 0x4f6   : > { %v2041_v48 = vmax.f32 %v2033_v17, %v2039_v61  ;;  %v2120_v8 = vmax.f32 %v2112_v28, %v2118_v22 }
 0x4f8   : > { %2521 = vrot.lane.b32.xlu0 %v2041_v48, %s3345_s16 }
 0x4f9   : > { %v2280_v51 = vpop.permute.xlu0 %2279  ;;  %v2197_v0 = vpop.permute.xlu1 %2196 }
 0x4fa   : > { %v2199_v10 = vmax.f32 %v2191_v36, %v2197_v0  ;;  %v2282_v41 = vmax.f32 %v2274_v16, %v2280_v51 }
 0x4fc   : > { %2525 = vrot.lane.b32.xlu0 %v2120_v8, %s3330_s15 }
 0x4fd   : > { %v2438_v26 = vpop.permute.xlu0 %2437  ;;  %v2359_v30 = vpop.permute.xlu1 %2358 }
 0x4fe   : > { %v2440_v31 = vmax.f32 %v2432_v33, %v2438_v26  ;;  %v2361_v39 = vmax.f32 %v2353_v43, %v2359_v30 }
 0x500   : > { %2541 = vrot.lane.b32.xlu1 %v2440_v31, %s3346_s18  ;;  %2529 = vrot.lane.b32.xlu0 %v2199_v10, %s3347_s20 }
 0x501   : > { %v1336_v42 = vpop.permute.xlu0 %1335  ;;  %v2517_v40 = vpop.permute.xlu1 %2516 }
 0x502   : > { %v2519_v37 = vmax.f32 %v2511_v23, %v2517_v40  ;;  %v1338_v53 = vmax.f32 %v4018_v58, %v1336_v42 }
 0x504   : > { %1256 = vrot.lane.b32.xlu1 %v4016_v27, %s3344_s22  ;;  %2533 = vrot.lane.b32.xlu0 %v2282_v41, %s3343_s8  ;;  %s4085_s22 = scalar_lea.hbm %s4185_s6, %s2773_s23 }
 0x505   : > { %v1415_v49 = vpop.permute.xlu0 %1414  ;;  %v4063_v50 = vpop.permute.xlu1 %1959 }
 0x506   : > { %v1417_v12 = vmax.f32 %v4020_v14, %v1415_v49  ;;  %v1962_v20 = vmax.f32 %v4032_v5, %v4063_v50 }
 0x508   : > { %1822 = vrot.lane.b32.xlu1 %v1417_v12, %s3330_s15  ;;  %2537 = vrot.lane.b32.xlu0 %v2361_v39, %s3348_s13 }
 0x509   : > { %v1494_v52 = vpop.permute.xlu1 %1493 }
 0x50a   : > { %v1496_v24 = vmax.f32 %v4022_v2, %v1494_v52 }
 0x50c   : > { %2545 = vrot.lane.b32.xlu0 %v2519_v37, %s3349_s17 }
 0x50d   : > { %v1577_v46 = vpop.permute.xlu1 %1576 }
 0x50e   : > { %v1579_v54 = vmax.f32 %v4024_v47, %v1577_v46 }
 0x510   : > { %1818 = vrot.lane.b32.xlu0 %v1338_v53, %s3345_s16  ;;  %1830 = vrot.lane.b32.xlu1 %v1579_v54, %s3343_s8  ;;  %s2563_s16 = scalar_lea.sflag [#allocation5], %s3921_s29 }
 0x511   : > { %v1656_v55 = vpop.permute.xlu1 %1655 }
 0x512   : > { %v1658_v35 = vmax.f32 %v4026_v11, %v1656_v55 }
 0x514   : > { %1826 = vrot.lane.b32.xlu0 %v1496_v24, %s3347_s20  ;;  %s3228_s20 = sshll.u32 %s3350_s9, 4  ;;  %s3229_s20 = int_to_ptr.vmem [resolvable:$false] %s3228_s20 }
 0x515   : > { %v1735_v19 = vpop.permute.xlu1 %1734  ;;  %p3231_p2 = scmp.lt.s32.totalorder %s4079_s21, %s3229_s20 }
 0x516   : > { %v1737_v63 = vmax.f32 %v4028_v1, %v1735_v19 }
 0x518   : > { %1834 = vrot.lane.b32.xlu0 %v1658_v35, %s3348_s13  ;;  %1838 = vrot.lane.b32.xlu1 %v1737_v63, %s3346_s18  ;;  %s3224_s18 = scalar_lea.vmem %s4079_s21, 512  ;;  %s3230_s13 = scalar_lea.vmem %s3229_s20, 1024 }
 0x519   : > { %v1814_v56 = vpop.permute.xlu1 %1813  ;;  %p3225_p6 = scmp.ne.s32.totalorder %s4079_s21, %s3224_s18  ;;  %p3232_p3 = scmp.lt.s32.totalorder %s3230_s13, %s3224_s18 }
 0x51a   : > { %v1816_v57 = vmax.f32 %v4030_v13, %v1814_v56 }
 0x51b   : > { %p3226_p10 = pnand %p3225_p6, %p4197_p9  ;;  %p3233_p4 = por %p3232_p3, %p3231_p2 }
 0x51c   : > { %1842 = vrot.lane.b32.xlu0 %v1816_v57, %s3349_s17 }
 0x51d   : > { %p3227_p12 = pneg %p3226_p10 }
 0x51f   : > { %p3234_p7 = pnand %p3233_p4, %p3227_p12 }
 0x56a   : > { %v2522_v18 = vpop.permute.xlu0 %2521 }
 0x56e   : > { %v2526_v21 = vpop.permute.xlu0 %2525 }
 0x572   : > { %v2530_v45 = vpop.permute.xlu0 %2529  ;;  %v2542_v58 = vpop.permute.xlu1 %2541 }
 0x576   : > { %v2534_v14 = vpop.permute.xlu0 %2533 }
 0x577   : > { %3237 = shalt.err (!%p3234_p7)
}
 0x578   : > { %s3238_s17 = scalar_lea.hbm %s4085_s22, 512  ;;  %s3242_s8 = scalar_lea.hbm %s4185_s6, 1024 }
 0x579   : > { %p3239_p8 = scmp.ne.s32.totalorder %s4085_s22, %s3238_s17  ;;  %p3243_p1 = scmp.lt.u32.totalorder %s4085_s22, %s4185_s6 }
 0x57a   : > { %p3244_p0 = scmp.lt.u32.totalorder %s3242_s8, %s3238_s17  ;;  %p3246_p6 = scmp.lt.u32.totalorder %s3238_s17, %s4085_s22 }
 0x57b   : > { %p3240_p11 = pnand %p3239_p8, %p4197_p9 }
 0x57c   : > { %p3245_p5 = por %p3244_p0, %p3243_p1 }
 0x57d   : > { %p3241_p13 = pneg %p3240_p11 }
 0x57e   : > { %p3247_p10 = por %p3246_p6, %p3245_p5 }
 0x580   : > { %p3248_p12 = pnand %p3247_p10, %p3241_p13 }
 0x582   : > { %3251 = shalt.err (!%p3248_p12)
}
 0x583   : > { %s3351_s18 = smov 256   ;;  %v2548_v59 = vsel %vm1845_vm0, %v1962_v20, %v2522_v18  ;;  %vm1850_vm2 = vcmask 261120   ;;  %vm1852_vm3 = vcmask 326656   ;;  %v2538_v62 = vpop.permute.xlu0 %2537  ;;  %vm1854_vm5 = vcmask 392192   ;;  %v1257_v11 = vpop.permute.xlu1 %1256  ;;  %s2568_s23 = scalar_lea.sflag [#allocation8], %s3921_s29 }
 0x584   : > { %3002 = dma.vmem_to_hbm [thread:$0]  (%p4197_p9), %s4079_s21, 512, %s4085_s22, %s2563_s16, %s3351_s18, %s3351_s18, %s3330_s15   ;;  %v2549_v60 = vsel %vm621_vm4, %v2548_v59, %v2526_v21  ;;  %vm1856_vm6 = vcmask 457728   ;;  %v1259_v13 = vmax.f32 %v4016_v27, %v1257_v11 }
 0x585   : > { %v2550_v2 = vsel %vm1848_vm1, %v2549_v60, %v2530_v45  ;;  %s2720_s15 = sshll.u32 %s3921_s29, 3 }
 0x586   : > { %v2551_v47 = vsel %vm1850_vm2, %v2550_v2, %v2534_v14  ;;  %s316_s21 = scalar_lea.vmem [#allocation7], %s2720_s15 }
 0x587   : > { %v2552_v7 = vsel %vm1852_vm3, %v2551_v47, %v2538_v62  ;;  %v2546_v1 = vpop.permute.xlu0 %2545  ;;  %v1823_v5 = vpop.permute.xlu1 %1822  ;;  %s2598_s22 = sshll.u32 %s316_s21, 4  ;;  %s4138_s22 = int_to_ptr.vmem [resolvable:$true] %s2598_s22 }
 0x588   : > { %v2553_v3 = vsel %vm1854_vm5, %v2552_v7, %v2542_v58  ;;  %s3252_s19 = scalar_lea.vmem %s4138_s22, 128 }
 0x589   : > { %v2554_v4 = vsel %vm1856_vm6, %v2553_v3, %v2546_v1  ;;  %p3253_p2 = scmp.ne.s32.totalorder %s4138_s22, %s3252_s19 }
 0x58a   : > { %2556 = vrot.lane.b32.xlu1 %v2554_v4, %s3342_s14  ;;  %s2767_s14 = sshll.u32 %s3414_s28, 7  ;;  %s3352_s28 = smov [#allocation7]  }
 0x58b   : > { %v1819_v6 = vpop.permute.xlu0 %1818  ;;  %v1831_v17 = vpop.permute.xlu1 %1830  ;;  %s4136_s17 = scalar_lea.hbm %s4186_s7, %s2767_s14  ;;  %p3254_p3 = pnand %p3253_p2, %p4197_p9 }
 0x58c   : > { %v1846_v15 = vsel %vm1845_vm0, %v1259_v13, %v1819_v6  ;;  %s3256_s8 = sshll.u32 %s3352_s28, 4  ;;  %s3257_s8 = int_to_ptr.vmem [resolvable:$false] %s3256_s8 }
 0x58d   : > { %v1847_v9 = vsel %vm621_vm4, %v1846_v15, %v1823_v5  ;;  %vm2559_vm4 = vcmask 523264   ;;  %p3255_p4 = pneg %p3254_p3  ;;  %s3258_s9 = scalar_lea.vmem %s3257_s8, 256 }
 0x58e   : > { %p3259_p7 = scmp.lt.s32.totalorder %s4138_s22, %s3257_s8  ;;  %p3260_p8 = scmp.lt.s32.totalorder %s3258_s9, %s3252_s19 }
 0x58f   : > { %v1827_v28 = vpop.permute.xlu0 %1826  ;;  %v1839_v38 = vpop.permute.xlu1 %1838 }
 0x590   : > { %v1849_v25 = vsel %vm1848_vm1, %v1847_v9, %v1827_v28  ;;  %p3261_p11 = por %p3260_p8, %p3259_p7 }
 0x591   : > { %v1851_v36 = vsel %vm1850_vm2, %v1849_v25, %v1831_v17 }
 0x592   : > { %p3262_p13 = pnand %p3261_p11, %p3255_p4 }
 0x593   : > { %v1835_v16 = vpop.permute.xlu0 %1834 }
 0x594   : > { %v1853_v29 = vsel %vm1852_vm3, %v1851_v36, %v1835_v16 }
 0x595   : > { %v1855_v27 = vsel %vm1854_vm5, %v1853_v29, %v1839_v38 }
 0x597   : > { %v1843_v43 = vpop.permute.xlu0 %1842 }
 0x598   : > { %v1857_v33 = vsel %vm1856_vm6, %v1855_v27, %v1843_v43 }
 0x5fc   : > { %v2557_v34 = vpop.permute.xlu1 %2556 }
 0x5fd   : > { %v2560_v44 = vsel %vm2559_vm4, %v1857_v33, %v2557_v34 }
 0x5fe   : > { %2561 = vst [vmem:[%s316_s21] sm:$0xff] %v2560_v44 }
 0x5ff   : > { %3265 = shalt.err (!%p3262_p13)
}
 0x600   : > { %s3266_s29 = scalar_lea.hbm %s4136_s17, 128  ;;  %s3270_s15 = scalar_lea.hbm %s4186_s7, 256 }
 0x601   : > { %p3267_p1 = scmp.ne.s32.totalorder %s4136_s17, %s3266_s29  ;;  %p3271_p6 = scmp.lt.u32.totalorder %s4136_s17, %s4186_s7 }
 0x602   : > { %p3272_p10 = scmp.lt.u32.totalorder %s3270_s15, %s3266_s29  ;;  %p3274_p2 = scmp.lt.u32.totalorder %s3266_s29, %s4136_s17 }
 0x603   : > { %p3268_p0 = pnand %p3267_p1, %p4197_p9 }
 0x604   : > { %p3273_p12 = por %p3272_p10, %p3271_p6 }
 0x605   : > { %p3269_p5 = pneg %p3268_p0 }
 0x606   : > { %p3275_p3 = por %p3274_p2, %p3273_p12 }
 0x608   : > { %p3276_p4 = pnand %p3275_p3, %p3269_p5 }
 0x60a   : > { %3279 = shalt.err (!%p3276_p4)
}
 0x60b   : > { %3003 = dma.vmem_to_hbm [thread:$0]  (%p4197_p9), %s4138_s22, 128, %s4136_s17, %s2568_s23  }
 0x60c PF: > { %p3019_p7 = scmp.ge.s32.totalorder %s3322_s27, 2  ;;  %s2610_s16 = sand.u32 1, %s3310_s24  }
 0x60d   : > { %p4198_p8 = scmp.ne.s32.totalorder %s4191_s12, 0  ;;  %s2611_s13 = scalar_lea.sflag [#allocation5], %s2610_s16 }
 0x60f   : > { %p3011_p11 = pnand %p3019_p7, %p4198_p8 }
 0x611   : > { %3301 = dma.done.wait (!%p3011_p11), %s2611_s13, 512  }
 0x612   : > { %3303 = vsyncadd (!%p3011_p11), %s2611_s13, 4294966784  ;;  %s2620_s19 = scalar_lea.sflag [#allocation8], %s2610_s16 }
 0x613   : > { %3305 = dma.done.wait (!%p3011_p11), %s2620_s19, 128  }
 0x614   : > { %3307 = vsyncadd (!%p3011_p11), %s2620_s19, 4294967168  ;;  %p22_p9 = scmp.ge.s32.totalorder %s3418_s30, 4   ;;  %s4199_s24 = smov %s3314_s25 }
 0x615   : > { %s4200_s25 = smov %s3318_s26  ;;  %s4201_s26 = smov %s3429_s10 }
 0x616   : > { %s4202_s27 = smov %s3418_s30  ;;  %24 = sbr.rel (!%p22_p9) target bundleno = 6 (0x6), region = 115 }
 0x61d   :  { %2625 = vsyncpa [#allocation4], 1 }
 0x61e   :  { %2627 = vsyncpa [#allocation4 + $0x1], 1 }
 0x61f   :  { %2628 = vsyncpa [#allocation5], 1 }
 0x620   :  { %2630 = vsyncpa [#allocation5 + $0x1], 1 }
 0x621   :  { %2631 = vsyncpa [#allocation8], 1 }
 0x622   :  { %2633 = vsyncpa [#allocation8 + $0x1], 1 }

</bundles_post_ra>
